<compile_context>
chip_gen: v6e
topology: v6e:2x2x1
jax: 0.10.0
libtpu: 0.0.40
codegen_flags: <defaults>
</compile_context>

<pallas_src>
import jax
import jax.numpy as jnp
from jax.experimental import pallas as pl
from jax.experimental.pallas import tpu as pltpu

_SQRT_2_OVER_PI = 0.7978845608028654
_INV_SQRT2 = 0.7071067811865476


def _gelu_tanh(x):
    # tanh-approximate GELU (runs on the EUP slot).  nn.GELU default is exact
    # erf; max absolute deviation of this approximation is ~3e-4.
    return 0.5 * x * (1.0 + jnp.tanh(_SQRT_2_OVER_PI * (x + 0.044715 * x * x * x)))


def _irmlp_kernel(xcol_ref, res_ref, w1_ref, w2_ref, b2_ref, w3_ref, b3_ref, o_ref):
    n, hw, kc = xcol_ref.shape          # (imgs_per_step, H*W, 9*C), bf16
    c = res_ref.shape[-1]
    co = o_ref.shape[-1]

    xcol = xcol_ref[...].reshape(n * hw, kc)       # bf16, stride-free collapse
    res = res_ref[...].reshape(n * hw, c)          # f32 residual

    # conv1 (dense 3x3) as a single K=9C MXU matmul, f32 accumulation.
    h = jnp.dot(xcol, w1_ref[...], preferred_element_type=jnp.float32)

    # GELU -> residual add.  (BN1 is folded into w2/b2.)
    h = _gelu_tanh(h) + res

    # conv2 (1x1, C -> 4C) with BN1 folded in, + GELU.
    g = jnp.dot(h.astype(jnp.bfloat16), w2_ref[...],
                preferred_element_type=jnp.float32) + b2_ref[...]
    g = _gelu_tanh(g)

    # conv3 (1x1, 4C -> Co) with BN3 folded in.
    y = jnp.dot(g.astype(jnp.bfloat16), w3_ref[...],
                preferred_element_type=jnp.float32) + b3_ref[...]

    o_ref[...] = y.reshape(n, hw, co)


def irmlp_forward(x, params):
    """x: (B, C, H, W) float32 -> (B, Cout, H, W) float32 (eval mode)."""
    B, C, H, W = x.shape
    Cm = params["w2"].shape[0]           # 4*C
    Co = params["w3"].shape[0]           # out_dim
    HW = H * W
    eps = 1e-5

    # --- wrapper-side layout prep (XLA glue; module interface is NCHW) ---
    xhwc = jnp.transpose(x, (0, 2, 3, 1))                        # (B,H,W,C)
    xp = jnp.pad(xhwc, ((0, 0), (1, 1), (1, 1), (0, 0)))
    # im2col: tap order (dy major, dx minor), C channels per tap -> (B, HW, 9C)
    cols = jnp.concatenate(
        [xp[:, dy:dy + H, dx:dx + W, :] for dy in range(3) for dx in range(3)],
        axis=-1)
    xcol = cols.reshape(B, HW, 9 * C).astype(jnp.bfloat16)
    residual = xhwc.reshape(B, HW, C)                            # f32

    # conv1 weight (Cout,Cin,3,3) OIHW -> (kh,kw,Cin,Cout) -> (9C, C), matches
    # the im2col column order ((dy*3+dx)*C + cin).
    w1col = jnp.transpose(params["w1"], (2, 3, 1, 0)).reshape(9 * C, C)

    # Fold eval-mode BN1 into conv2 and BN3 into conv3.
    def bn_scale_shift(p):
        scale = p["gamma"] * jax.lax.rsqrt(p["var"] + eps)
        shift = p["beta"] - p["mean"] * scale
        return scale, shift

    s1, t1 = bn_scale_shift(params["bn1"])
    s3, t3 = bn_scale_shift(params["bn3"])

    w2 = jnp.transpose(params["w2"][:, :, 0, 0], (1, 0))         # (C, 4C)
    w3 = jnp.transpose(params["w3"][:, :, 0, 0], (1, 0))         # (4C, Co)
    w2f = s1[:, None] * w2                                       # (C, 4C)
    b2 = (t1 @ w2).reshape(1, Cm)                                # (1, 4C) f32
    w3f = w3 * s3[None, :]                                       # (4C, Co)
    b3 = t3.reshape(1, Co)                                       # (1, Co) f32

    w1col = w1col.astype(jnp.bfloat16)
    w2f = w2f.astype(jnp.bfloat16)
    w3f = w3f.astype(jnp.bfloat16)

    # Grid: at most 2 steps so dual-TC chips (v7x) use both cores; on
    # single-TC v5e/v6e the second step only adds ~0.35 us of fixed overhead.
    if B >= 2 and B % 2 == 0:
        steps, ipb = 2, B // 2
    else:
        steps, ipb = 1, B

    out_flat = pl.pallas_call(
        _irmlp_kernel,
        out_shape=jax.ShapeDtypeStruct((B, HW, Co), jnp.float32),
        grid_spec=pltpu.PrefetchScalarGridSpec(
            num_scalar_prefetch=0,
            grid=(steps,),
            in_specs=[
                pl.BlockSpec((ipb, HW, 9 * C), lambda b: (b, 0, 0)),   # im2col x
                pl.BlockSpec((ipb, HW, C), lambda b: (b, 0, 0)),       # residual
                pl.BlockSpec((9 * C, C), lambda b: (0, 0)),            # conv1 W
                pl.BlockSpec((C, Cm), lambda b: (0, 0)),               # conv2 W (BN1 folded)
                pl.BlockSpec((1, Cm), lambda b: (0, 0)),               # bias2
                pl.BlockSpec((Cm, Co), lambda b: (0, 0)),              # conv3 W (BN3 folded)
                pl.BlockSpec((1, Co), lambda b: (0, 0)),               # bias3
            ],
            out_specs=pl.BlockSpec((ipb, HW, Co), lambda b: (b, 0, 0)),
        ),
        compiler_params=pltpu.CompilerParams(
            dimension_semantics=("parallel",),
            vmem_limit_bytes=32 * 1024 * 1024),
    )(xcol, residual, w1col, w2f, b2, w3f, b3)

    # back to NCHW (module interface)
    return out_flat.reshape(B, H, W, Co).transpose(0, 3, 1, 2)


def _reference_forward(x, params):
    """Pure-JAX reference mirroring PyTorch IRMLP.forward (eval mode, f32, erf GELU)."""
    eps = 1e-5

    def gelu(v):
        return 0.5 * v * (1.0 + jax.lax.erf(v * _INV_SQRT2))

    def bn(v, p):
        scale = p["gamma"] / jnp.sqrt(p["var"] + eps)
        shift = p["beta"] - p["mean"] * scale
        return v * scale[None, :, None, None] + shift[None, :, None, None]

    def conv(v, w, pad):
        return jax.lax.conv_general_dilated(
            v, w, window_strides=(1, 1), padding=pad,
            dimension_numbers=("NCHW", "OIHW", "NCHW"),
            precision=jax.lax.Precision.HIGHEST)

    residual = x
    out = conv(x, params["w1"], ((1, 1), (1, 1)))
    out = gelu(out)
    out = out + residual
    out = bn(out, params["bn1"])
    out = conv(out, params["w2"], ((0, 0), (0, 0)))
    out = gelu(out)
    out = conv(out, params["w3"], ((0, 0), (0, 0)))
    out = bn(out, params["bn3"])
    return out


if __name__ == "__main__":
    # Small config consistent with IRMLP: inp_dim=32, out_dim=32 (hidden = 128).
    B, C, H, W = 2, 32, 16, 16
    out_dim = 32

    key = jax.random.PRNGKey(0)
    ks = jax.random.split(key, 12)
    params = {
        "w1": 0.05 * jax.random.normal(ks[0], (C, C, 3, 3), jnp.float32),
        "w2": 0.05 * jax.random.normal(ks[1], (4 * C, C, 1, 1), jnp.float32),
        "w3": 0.05 * jax.random.normal(ks[2], (out_dim, 4 * C, 1, 1), jnp.float32),
        "bn1": {
            "gamma": 1.0 + 0.1 * jax.random.normal(ks[3], (C,), jnp.float32),
            "beta": 0.1 * jax.random.normal(ks[4], (C,), jnp.float32),
            "mean": 0.1 * jax.random.normal(ks[5], (C,), jnp.float32),
            "var": jax.random.uniform(ks[6], (C,), jnp.float32, 0.5, 1.5),
        },
        "bn3": {
            "gamma": 1.0 + 0.1 * jax.random.normal(ks[7], (out_dim,), jnp.float32),
            "beta": 0.1 * jax.random.normal(ks[8], (out_dim,), jnp.float32),
            "mean": 0.1 * jax.random.normal(ks[9], (out_dim,), jnp.float32),
            "var": jax.random.uniform(ks[10], (out_dim,), jnp.float32, 0.5, 1.5),
        },
    }
    x = jax.random.normal(ks[11], (B, C, H, W), jnp.float32)

    out = jax.jit(irmlp_forward)(x, params)
    out = jax.block_until_ready(out)

    ref = _reference_forward(x, params)
    assert out.shape == (B, out_dim, H, W)
    # Tolerance loosened vs. the exact-erf / f32 reference because the kernel
    # uses tanh-approx GELU and bf16 MXU operands (per perf review).
    assert jnp.allclose(out, ref, rtol=5e-2, atol=5e-2), "mismatch vs pure-JAX reference"

    print("KERNEL_OK")
</pallas_src>

<mosaic_0001>
module attributes {stable_mosaic.version = 11 : i64} {
  func.func @_irmlp_kernel(%arg0: i32, %arg1: memref<1x256x288xbf16, #tpu.memory_space<vmem>>, %arg2: memref<1x256x32xf32, #tpu.memory_space<vmem>>, %arg3: memref<288x32xbf16, #tpu.memory_space<vmem>>, %arg4: memref<32x128xbf16, #tpu.memory_space<vmem>>, %arg5: memref<1x128xf32, #tpu.memory_space<vmem>>, %arg6: memref<128x32xbf16, #tpu.memory_space<vmem>>, %arg7: memref<1x32xf32, #tpu.memory_space<vmem>>, %arg8: memref<1x256x32xf32, #tpu.memory_space<vmem>>) attributes {dimension_semantics = [#tpu.dimension_semantics<parallel>], iteration_bounds = array<i64: 2>, scalar_prefetch = 0 : i64, scratch_operands = 0 : i64, tpu.core_type = #tpu.core_type<tc>, window_params = [{transform_indices = @transform_0, window_bounds = array<i64: 1, 256, 288>}, {transform_indices = @transform_1, window_bounds = array<i64: 1, 256, 32>}, {pipeline_mode = #tpu.pipeline_mode<synchronous>, transform_indices = @transform_2, window_bounds = array<i64: 288, 32>}, {pipeline_mode = #tpu.pipeline_mode<synchronous>, transform_indices = @transform_3, window_bounds = array<i64: 32, 128>}, {pipeline_mode = #tpu.pipeline_mode<synchronous>, transform_indices = @transform_4, window_bounds = array<i64: 1, 128>}, {pipeline_mode = #tpu.pipeline_mode<synchronous>, transform_indices = @transform_5, window_bounds = array<i64: 128, 32>}, {pipeline_mode = #tpu.pipeline_mode<synchronous>, transform_indices = @transform_6, window_bounds = array<i64: 1, 32>}, {transform_indices = @transform_7, window_bounds = array<i64: 1, 256, 32>}]} {
    %c0 = arith.constant 0 : index
    %c0_0 = arith.constant 0 : index
    %c0_1 = arith.constant 0 : index
    %0 = vector.load %arg1[%c0, %c0_0, %c0_1] : memref<1x256x288xbf16, #tpu.memory_space<vmem>>, vector<1x256x288xbf16>
    %1 = vector.shape_cast %0 : vector<1x256x288xbf16> to vector<256x288xbf16>
    %c0_2 = arith.constant 0 : index
    %c0_3 = arith.constant 0 : index
    %c0_4 = arith.constant 0 : index
    %2 = vector.load %arg2[%c0_2, %c0_3, %c0_4] : memref<1x256x32xf32, #tpu.memory_space<vmem>>, vector<1x256x32xf32>
    %3 = vector.shape_cast %2 : vector<1x256x32xf32> to vector<256x32xf32>
    %c0_5 = arith.constant 0 : index
    %c0_6 = arith.constant 0 : index
    %4 = vector.load %arg3[%c0_5, %c0_6] : memref<288x32xbf16, #tpu.memory_space<vmem>>, vector<288x32xbf16>
    %cst = arith.constant dense<0.000000e+00> : vector<256x32xf32>
    %5 = tpu.matmul %1, %4, %cst {dimension_numbers = #tpu.dot_dimension_numbers<[1], [0], [0], [1], [0, 0, 1, 1], [], []>} : vector<256x288xbf16>, vector<288x32xbf16>, vector<256x32xf32> -> vector<256x32xf32>
    %cst_7 = arith.constant 5.000000e-01 : f32
    %6 = vector.broadcast %cst_7 : f32 to vector<256x32xf32>
    %7 = arith.mulf %6, %5 : vector<256x32xf32>
    %cst_8 = arith.constant 4.471500e-02 : f32
    %8 = vector.broadcast %cst_8 : f32 to vector<256x32xf32>
    %9 = arith.mulf %8, %5 : vector<256x32xf32>
    %10 = arith.mulf %9, %5 : vector<256x32xf32>
    %11 = arith.mulf %10, %5 : vector<256x32xf32>
    %12 = arith.addf %5, %11 : vector<256x32xf32>
    %cst_9 = arith.constant 0.797884583 : f32
    %13 = vector.broadcast %cst_9 : f32 to vector<256x32xf32>
    %14 = arith.mulf %13, %12 : vector<256x32xf32>
    %15 = math.tanh %14 : vector<256x32xf32>
    %cst_10 = arith.constant 1.000000e+00 : f32
    %16 = vector.broadcast %cst_10 : f32 to vector<256x32xf32>
    %17 = arith.addf %16, %15 : vector<256x32xf32>
    %18 = arith.mulf %7, %17 : vector<256x32xf32>
    %19 = arith.addf %18, %3 : vector<256x32xf32>
    %20 = arith.truncf %19 : vector<256x32xf32> to vector<256x32xbf16>
    %c0_11 = arith.constant 0 : index
    %c0_12 = arith.constant 0 : index
    %21 = vector.load %arg4[%c0_11, %c0_12] : memref<32x128xbf16, #tpu.memory_space<vmem>>, vector<32x128xbf16>
    %cst_13 = arith.constant dense<0.000000e+00> : vector<256x128xf32>
    %22 = tpu.matmul %20, %21, %cst_13 {dimension_numbers = #tpu.dot_dimension_numbers<[1], [0], [0], [1], [0, 0, 1, 1], [], []>} : vector<256x32xbf16>, vector<32x128xbf16>, vector<256x128xf32> -> vector<256x128xf32>
    %c0_14 = arith.constant 0 : index
    %c0_15 = arith.constant 0 : index
    %23 = vector.load %arg5[%c0_14, %c0_15] : memref<1x128xf32, #tpu.memory_space<vmem>>, vector<1x128xf32>
    %24 = vector.broadcast %23 : vector<1x128xf32> to vector<256x128xf32>
    %25 = arith.addf %22, %24 : vector<256x128xf32>
    %cst_16 = arith.constant 5.000000e-01 : f32
    %26 = vector.broadcast %cst_16 : f32 to vector<256x128xf32>
    %27 = arith.mulf %26, %25 : vector<256x128xf32>
    %cst_17 = arith.constant 4.471500e-02 : f32
    %28 = vector.broadcast %cst_17 : f32 to vector<256x128xf32>
    %29 = arith.mulf %28, %25 : vector<256x128xf32>
    %30 = arith.mulf %29, %25 : vector<256x128xf32>
    %31 = arith.mulf %30, %25 : vector<256x128xf32>
    %32 = arith.addf %25, %31 : vector<256x128xf32>
    %cst_18 = arith.constant 0.797884583 : f32
    %33 = vector.broadcast %cst_18 : f32 to vector<256x128xf32>
    %34 = arith.mulf %33, %32 : vector<256x128xf32>
    %35 = math.tanh %34 : vector<256x128xf32>
    %cst_19 = arith.constant 1.000000e+00 : f32
    %36 = vector.broadcast %cst_19 : f32 to vector<256x128xf32>
    %37 = arith.addf %36, %35 : vector<256x128xf32>
    %38 = arith.mulf %27, %37 : vector<256x128xf32>
    %39 = arith.truncf %38 : vector<256x128xf32> to vector<256x128xbf16>
    %c0_20 = arith.constant 0 : index
    %c0_21 = arith.constant 0 : index
    %40 = vector.load %arg6[%c0_20, %c0_21] : memref<128x32xbf16, #tpu.memory_space<vmem>>, vector<128x32xbf16>
    %cst_22 = arith.constant dense<0.000000e+00> : vector<256x32xf32>
    %41 = tpu.matmul %39, %40, %cst_22 {dimension_numbers = #tpu.dot_dimension_numbers<[1], [0], [0], [1], [0, 0, 1, 1], [], []>} : vector<256x128xbf16>, vector<128x32xbf16>, vector<256x32xf32> -> vector<256x32xf32>
    %c0_23 = arith.constant 0 : index
    %c0_24 = arith.constant 0 : index
    %42 = vector.load %arg7[%c0_23, %c0_24] : memref<1x32xf32, #tpu.memory_space<vmem>>, vector<1x32xf32>
    %43 = vector.broadcast %42 : vector<1x32xf32> to vector<256x32xf32>
    %44 = arith.addf %41, %43 : vector<256x32xf32>
    %45 = vector.shape_cast %44 : vector<256x32xf32> to vector<1x256x32xf32>
    %c0_25 = arith.constant 0 : index
    %c0_26 = arith.constant 0 : index
    %c0_27 = arith.constant 0 : index
    %46 = vector.load %arg8[%c0_25, %c0_26, %c0_27] : memref<1x256x32xf32, #tpu.memory_space<vmem>>, vector<1x256x32xf32>
    tpu.vector_store %arg8[%c0_25, %c0_26, %c0_27], %45 {strides = array<i32>} : memref<1x256x32xf32, #tpu.memory_space<vmem>>, vector<1x256x32xf32>,
    return
  }
  func.func @transform_0(%arg0: i32) -> (i32, i32, i32) {
    %c0_i32 = arith.constant 0 : i32
    %c0_i32_0 = arith.constant 0 : i32
    %c0_i32_1 = arith.constant 0 : i32
    return %arg0, %c0_i32, %c0_i32_0 : i32, i32, i32
  }
  func.func @transform_1(%arg0: i32) -> (i32, i32, i32) {
    %c0_i32 = arith.constant 0 : i32
    %c0_i32_0 = arith.constant 0 : i32
    %c0_i32_1 = arith.constant 0 : i32
    return %arg0, %c0_i32, %c0_i32_0 : i32, i32, i32
  }
  func.func @transform_2(%arg0: i32) -> (i32, i32) {
    %c0_i32 = arith.constant 0 : i32
    %c0_i32_0 = arith.constant 0 : i32
    %c0_i32_1 = arith.constant 0 : i32
    return %c0_i32, %c0_i32_0 : i32, i32
  }
  func.func @transform_3(%arg0: i32) -> (i32, i32) {
    %c0_i32 = arith.constant 0 : i32
    %c0_i32_0 = arith.constant 0 : i32
    %c0_i32_1 = arith.constant 0 : i32
    return %c0_i32, %c0_i32_0 : i32, i32
  }
  func.func @transform_4(%arg0: i32) -> (i32, i32) {
    %c0_i32 = arith.constant 0 : i32
    %c0_i32_0 = arith.constant 0 : i32
    %c0_i32_1 = arith.constant 0 : i32
    return %c0_i32, %c0_i32_0 : i32, i32
  }
  func.func @transform_5(%arg0: i32) -> (i32, i32) {
    %c0_i32 = arith.constant 0 : i32
    %c0_i32_0 = arith.constant 0 : i32
    %c0_i32_1 = arith.constant 0 : i32
    return %c0_i32, %c0_i32_0 : i32, i32
  }
  func.func @transform_6(%arg0: i32) -> (i32, i32) {
    %c0_i32 = arith.constant 0 : i32
    %c0_i32_0 = arith.constant 0 : i32
    %c0_i32_1 = arith.constant 0 : i32
    return %c0_i32, %c0_i32_0 : i32, i32
  }
  func.func @transform_7(%arg0: i32) -> (i32, i32, i32) {
    %c0_i32 = arith.constant 0 : i32
    %c0_i32_0 = arith.constant 0 : i32
    %c0_i32_1 = arith.constant 0 : i32
    return %arg0, %c0_i32, %c0_i32_0 : i32, i32, i32
  }
}

</mosaic_0001>

<bundles_post_ra>
// kernel: irmlp_forward.1
= control target key start
LH: loop header
LB: loop body
LE: loop exit
PB: predicated region body
PF: predicated region fallthrough
CT: control target
= control target key end

     0   :  { %12 = vsyncpa [#allocation3], 0  ;;  %s4262_s0 = inlined_call_operand.vmem [shape: bf16[2,256,288], index: 0, kind: input, shape index: {}]   ;;  %s4263_s1 = inlined_call_operand.vmem [shape: f32[2,256,32], index: 1, kind: input, shape index: {}]   ;;  %s4264_s2 = inlined_call_operand.vmem [shape: bf16[288,32], index: 2, kind: input, shape index: {}]   ;;  %s4265_s3 = inlined_call_operand.vmem [shape: bf16[32,128], index: 3, kind: input, shape index: {}]   ;;  %s4266_s4 = inlined_call_operand.vmem [shape: f32[1,128], index: 4, kind: input, shape index: {}]   ;;  %s4267_s5 = inlined_call_operand.vmem [shape: bf16[128,32], index: 5, kind: input, shape index: {}]   ;;  %s4268_s6 = inlined_call_operand.vmem [shape: f32[1,32], index: 6, kind: input, shape index: {}]   ;;  %s4269_s7 = inlined_call_operand.hbm [shape: f32[2,256,32], index: 7, kind: output, shape index: {}]  }
   0x1   :  { %14 = vsyncpa [#allocation3 + $0x1], 0  ;;  %s3161_s24 = smov 0   ;;  %s3163_s25 = smov 0  }
   0x2   :  { %s3165_s26 = smov 0   ;;  %s3167_s27 = smov 0  }
   0x3 LB: > { %s3182_s28 = sadd.s32 4294967295, %s3116_s27   ;;  %s2373_s29 = sadd.s32 4294967294, %s3116_s27   ;;  %s3116_s27 = sphi %s3167_s27, %s4276_s27   ;;  %s3112_s26 = sphi %s3165_s26, %s4275_s26   ;;  %s3108_s25 = sphi %s3163_s25, %s4274_s25   ;;  %s3104_s24 = sphi %s3161_s24, %s4273_s24  }
   0x4   : > { %s3186_s30 = sadd.s32 1, %s3116_s27   ;;  %s184_s8 = sadd.s32 1, %s3112_s26 }
   0x5   : > { %s181_s9 = ssub.s32 %s3116_s27, %s3186_s30  ;;  %p194_p0 = scmp.ne.s32.totalorder %s3112_s26, %s3108_s25 }
   0x6   : > { %p182_p1 = scmp.eq.s32.totalorder %s181_s9, 0  ;;  %p195_p2 = scmp.eq.s32.totalorder %s3182_s28, 1 }
   0x7   : > { %p200_p3 = scmp.ne.s32.totalorder %s3108_s25, %s3104_s24  ;;  %p201_p4 = scmp.eq.s32.totalorder %s2373_s29, 1 }
   0x8   : > { %s3197_s10 = scalar_select %p182_p1, %s3112_s26, %s184_s8  }
   0x9   : > { %p3199_p5 = por %p195_p2, %p194_p0  ;;  %p3203_p6 = por %p201_p4, %p200_p3 }
   0xa   : > { %p2376_p7 = scmp.ge.s32.totalorder %s3116_s27, 1  ;;  %p250_p8 = scmp.lt.s32.totalorder %s3116_s27, 3 }
   0xc   : > { %p251_p9 = pnand %p2376_p7, %p250_p8 }
   0xd   : > { %p287_p10 = scmp.lt.s32.totalorder (!%p251_p9), %s3182_s28, 1  ;;  %s284_s13 = sand.u32 (!%p251_p9), 1, %s3108_s25  }
   0xe   : > { %254 = sbr.rel (%p251_p9) target bundleno = 931 (0x3a3), region = 48  ;;  %s2377_s15 = sshll.u32 (!%p251_p9), %s284_s13, 8 }
   0xf   : > { %s2497_s17 = sshll.u32 (!%p251_p9), %s3182_s28, 12  ;;  %s3118_s29 = smov (!%p251_p9), [#allocation2]  }
  0x10   : > { %s3060_s8 = sshll.u32 (!%p251_p9), %s3118_s29, 4  ;;  %s3061_s8 = int_to_ptr.vmem [resolvable:$false] %s3060_s8 }
  0x11   : > { %s3062_s9 = scalar_lea.vmem (!%p251_p9), %s3061_s8, 8192 }
  0x13   : > { %v2836_v0 = vld [vmem:[%s4264_s2 + $0x78] sm:$0xff]   ;;  %v2838_v2 = vld [vmem:[%s4264_s2 + $0x70] sm:$0xff]   ;;  %v2840_v4 = vld [vmem:[%s4264_s2 + $0x68] sm:$0xff]   ;;  %s3226_s23 = scalar_select %p287_p10, %s3182_s28, 1  ;;  %vm778_vm0 = vcmask 261120  }
  0x14   : > { %v2837_v1 = vld [vmem:[%s4264_s2 + $0x38] sm:$0xff]   ;;  %2498 = vmatprep.subr.bf16.mxu0 %v2836_v0  ;;  %v2839_v3 = vld [vmem:[%s4264_s2 + $0x30] sm:$0xff]   ;;  %v2841_v5 = vld [vmem:[%s4264_s2 + $0x28] sm:$0xff]   ;;  %s4222_s28 = scalar_lea.sflag [#allocation3], %s284_s13 }
  0x15   : > { %2499 = vmatpush3.bf16.msra.mxu0 %v2837_v1  ;;  %v2842_v6 = vld [vmem:[%s4264_s2 + $0x60] sm:$0xff]   ;;  %s2794_s14 = smul.u32 384, %s3226_s23  ;;  %v2844_v8 = vld [vmem:[%s4264_s2 + $0x58] sm:$0xff]   ;;  %v2846_v10 = vld [vmem:[%s4264_s2 + $0x50] sm:$0xff]   ;;  %s2496_s18 = sshll.u32 %s3226_s23, 8 }
  0x16   : > { %2500 = vmatprep.subr.bf16.mxu0 %v2838_v2  ;;  %v2843_v7 = vld [vmem:[%s4264_s2 + $0x20] sm:$0xff]   ;;  %v2845_v9 = vld [vmem:[%s4264_s2 + $0x18] sm:$0xff]   ;;  %v2855_v12 = vld [vmem:[%s4264_s2 + $0x88] sm:$0xff]   ;;  %s3409_s23 = scalar_lea.vmem %s4263_s1, %s2496_s18 }
  0x17   : > { %s3244_s21 = scalar_lea.vmem %s4262_s0, %s2794_s14  ;;  %v2847_v13 = vld [vmem:[%s4264_s2 + $0x10] sm:$0xff]   ;;  %v2848_v14 = vld [vmem:[%s4264_s2 + $0x48] sm:$0xff]   ;;  %2790 = vmatprep.subr.bf16.mxu1 %v2855_v12  ;;  %v2865_v16 = vld [vmem:[%s4264_s2 + $0x80] sm:$0xff]  }
  0x18   : > { %v2854_v11 = vld [vmem:[%s3244_s21 + $0x4] ss:$12 sps:$4 sm:$0xff]   ;;  %2792 = vmatpush3.bf16.msra.mxu1 %v2855_v12  ;;  %v2849_v15 = vld [vmem:[%s4264_s2 + $0x8] sm:$0xff]   ;;  %v2859_v27 = vld [vmem:[%s3244_s21 + $0x34] ss:$12 sps:$4 sm:$0xff]  }
  0x19   : > { %2501 = vmatpush3.bf16.msra.mxu0 %v2839_v3  ;;  %859 = vmatprep.mubr.bf16.mxu0 %v2854_v11  ;;  %v2850_v17 = vld [vmem:[%s4264_s2 + $0x40] sm:$0xff]   ;;  %v2869_v18 = vld [vmem:[%s3244_s21 + $0x68] ss:$12 sps:$4 sm:$0xff]   ;;  %v2878_v24 = vld [vmem:[%s3244_s21 + $0xb0] ss:$12 sps:$4 sm:$0xff]  }
  0x1a   : > { %2502 = vmatprep.subr.bf16.mxu0 %v2840_v4  ;;  %2791 = vmatprep.subr.bf16.mxu1 %v2865_v16  ;;  %v2870_v19 = vld [vmem:[%s3244_s21 + $0x80] ss:$12 sps:$4 sm:$0xff]   ;;  %v2877_v22 = vld [vmem:[%s3244_s21 + $0x98] ss:$12 sps:$4 sm:$0xff]   ;;  %v2856_v23 = vld [vmem:[%s3244_s21 + $0x1c] ss:$12 sps:$4 sm:$0xff]  }
  0x1b   : > { %v2851_v20 = vld [vmem:[%s4264_s2] sm:$0xff]   ;;  %2682 = vmatprep.mubr.msk.bf16.mxu1 %vm778_vm0, %v2869_v18  ;;  %v2885_v25 = vld [vmem:[%s3244_s21 + $0xc8] ss:$12 sps:$4 sm:$0xff]   ;;  %v2861_v30 = vld [vmem:[%s3244_s21 + $0x30] ss:$12 sps:$4 sm:$0xff]  }
  0x1c   : > { %2793 = vmatpush3.bf16.msra.mxu1 %v2865_v16  ;;  %v2852_v21 = vld [vmem:[%s3244_s21] ss:$12 sps:$4 sm:$0xff]   ;;  %v2858_v26 = vld [vmem:[%s3244_s21 + $0x18] ss:$12 sps:$4 sm:$0xff]   ;;  %v2894_v32 = vld [vmem:[%s3244_s21 + $0x110] ss:$12 sps:$4 sm:$0xff]  }
  0x1d   : > { %2503 = vmatpush3.bf16.msra.mxu0 %v2841_v5  ;;  %v2886_v28 = vld [vmem:[%s3244_s21 + $0xe0] ss:$12 sps:$4 sm:$0xff]   ;;  %v2893_v29 = vld [vmem:[%s3244_s21 + $0xf8] ss:$12 sps:$4 sm:$0xff]   ;;  %v2901_v33 = vld [vmem:[%s3244_s21 + $0x128] ss:$12 sps:$4 sm:$0xff]  }
  0x1e   : > { %2504 = vmatprep.subr.bf16.mxu0 %v2842_v6  ;;  %v2862_v31 = vld [vmem:[%s3244_s21 + $0x4c] ss:$12 sps:$4 sm:$0xff]   ;;  %v2864_v34 = vld [vmem:[%s3244_s21 + $0x48] ss:$12 sps:$4 sm:$0xff]   ;;  %v2866_v35 = vld [vmem:[%s3244_s21 + $0x64] ss:$12 sps:$4 sm:$0xff]  }
  0x1f   : > { %2683 = vmatmul.mubr.msk.bf16.vlgmr.msra.gmra.mxu1 %vm778_vm0, %v2870_v19  ;;  %v2902_v36 = vld [vmem:[%s3244_s21 + $0x140] ss:$12 sps:$4 sm:$0xff]   ;;  %v2909_v37 = vld [vmem:[%s3244_s21 + $0x158] ss:$12 sps:$4 sm:$0xff]   ;;  %v2871_v39 = vld [vmem:[%s3244_s21 + $0x7c] ss:$12 sps:$4 sm:$0xff]  }
  0x20   : > { %2686 = vmatprep.mubr.msk.bf16.mxu1 %vm778_vm0, %v2877_v22  ;;  %v2868_v38 = vld [vmem:[%s3244_s21 + $0x60] ss:$12 sps:$4 sm:$0xff]   ;;  %v2910_v40 = vld [vmem:[%s3244_s21 + $0x170] ss:$12 sps:$4 sm:$0xff]   ;;  %v2873_v41 = vld [vmem:[%s3244_s21 + $0x78] ss:$12 sps:$4 sm:$0xff]  }
  0x21   : > { %2505 = vmatpush3.bf16.msra.mxu0 %v2843_v7  ;;  %v2874_v42 = vld [vmem:[%s3244_s21 + $0x94] ss:$12 sps:$4 sm:$0xff]   ;;  %v2876_v43 = vld [vmem:[%s3244_s21 + $0x90] ss:$12 sps:$4 sm:$0xff]   ;;  %v2879_v44 = vld [vmem:[%s3244_s21 + $0xac] ss:$12 sps:$4 sm:$0xff]  }
  0x22   : > { %2506 = vmatprep.subr.bf16.mxu0 %v2844_v8  ;;  %v2881_v45 = vld [vmem:[%s3244_s21 + $0xa8] ss:$12 sps:$4 sm:$0xff]   ;;  %v2882_v46 = vld [vmem:[%s3244_s21 + $0xc4] ss:$12 sps:$4 sm:$0xff]   ;;  %v2884_v47 = vld [vmem:[%s3244_s21 + $0xc0] ss:$12 sps:$4 sm:$0xff]  }
  0x23   : > { %v2887_v48 = vld [vmem:[%s3244_s21 + $0xdc] ss:$12 sps:$4 sm:$0xff]   ;;  %v2889_v49 = vld [vmem:[%s3244_s21 + $0xd8] ss:$12 sps:$4 sm:$0xff]   ;;  %v2890_v50 = vld [vmem:[%s3244_s21 + $0xf4] ss:$12 sps:$4 sm:$0xff]  }
  0x24   : > { %v2892_v51 = vld [vmem:[%s3244_s21 + $0xf0] ss:$12 sps:$4 sm:$0xff]   ;;  %v2895_v52 = vld [vmem:[%s3244_s21 + $0x10c] ss:$12 sps:$4 sm:$0xff]   ;;  %v2897_v53 = vld [vmem:[%s3244_s21 + $0x108] ss:$12 sps:$4 sm:$0xff]  }
  0x25   : > { %2507 = vmatpush3.bf16.msra.mxu0 %v2845_v9  ;;  %v2898_v54 = vld [vmem:[%s3244_s21 + $0x124] ss:$12 sps:$4 sm:$0xff]   ;;  %v2900_v55 = vld [vmem:[%s3244_s21 + $0x120] ss:$12 sps:$4 sm:$0xff]   ;;  %v2903_v56 = vld [vmem:[%s3244_s21 + $0x13c] ss:$12 sps:$4 sm:$0xff]  }
  0x26   : > { %2508 = vmatprep.subr.bf16.mxu0 %v2846_v10  ;;  %v2905_v57 = vld [vmem:[%s3244_s21 + $0x138] ss:$12 sps:$4 sm:$0xff]   ;;  %v2906_v58 = vld [vmem:[%s3244_s21 + $0x154] ss:$12 sps:$4 sm:$0xff]   ;;  %v2908_v59 = vld [vmem:[%s3244_s21 + $0x150] ss:$12 sps:$4 sm:$0xff]  }
  0x27   : > { %2687 = vmatmul.mubr.msk.bf16.gmra.mxu1 %vm778_vm0, %v2878_v24  ;;  %v2911_v60 = vld [vmem:[%s3244_s21 + $0x16c] ss:$12 sps:$4 sm:$0xff]   ;;  %v2913_v61 = vld [vmem:[%s3244_s21 + $0x168] ss:$12 sps:$4 sm:$0xff]   ;;  %v2917_v1 = vld [vmem:[%s3244_s21 + $0x50] ss:$12 sps:$4 sm:$0xff]  }
  0x28   : > { %2690 = vmatprep.mubr.msk.bf16.mxu1 %vm778_vm0, %v2885_v25  ;;  %v2914_v62 = vld [vmem:[%s3244_s21 + $0x8] ss:$12 sps:$4 sm:$0xff]   ;;  %v2915_v63 = vld [vmem:[%s3244_s21 + $0x20] ss:$12 sps:$4 sm:$0xff]   ;;  %v2916_v0 = vld [vmem:[%s3244_s21 + $0x38] ss:$12 sps:$4 sm:$0xff]  }
  0x29   : > { %2509 = vmatpush3.bf16.msra.mxu0 %v2847_v13  ;;  %v2918_v9 = vld [vmem:[%s4265_s3 + $0x8] sm:$0xff]   ;;  %s4114_s21 = scalar_lea.vmem [#allocation2], %s2377_s15 }
  0x2a   : > { %2510 = vmatprep.subr.bf16.mxu0 %v2848_v14  ;;  %2706 = vmatprep.subr.bf16.mxu1 %v2918_v9  ;;  %s2299_s18 = sshll.u32 %s4114_s21, 4  ;;  %s4213_s18 = int_to_ptr.vmem [resolvable:$true] %s2299_s18 }
  0x2b   : > { %2707 = vmatpush3.bf16.msra.mxu1 %v2918_v9  ;;  %s3056_s22 = scalar_lea.vmem %s4213_s18, 4096  ;;  %p3063_p0 = scmp.lt.s32.totalorder %s4213_s18, %s3061_s8 }
  0x2c   : > { %p3057_p11 = scmp.ne.s32.totalorder %s4213_s18, %s3056_s22  ;;  %p3064_p1 = scmp.lt.s32.totalorder %s3062_s9, %s3056_s22 }
  0x2d   : > { %2511 = vmatpush3.bf16.msra.mxu0 %v2849_v15 }
  0x2e   : > { %2512 = vmatprep.subr.bf16.mxu0 %v2850_v17  ;;  %p3058_p12 = pnand %p3057_p11, %p3199_p5  ;;  %p3065_p2 = por %p3064_p1, %p3063_p0 }
  0x2f   : > { %2691 = vmatmul.mubr.msk.bf16.gmra.mxu1 %vm778_vm0, %v2886_v28 }
  0x30   : > { %2694 = vmatprep.mubr.msk.bf16.mxu1 %vm778_vm0, %v2893_v29  ;;  %p3059_p13 = pneg %p3058_p12 }
  0x31   : > { %2513 = vmatpush3.bf16.msra.mxu0 %v2851_v20 }
  0x32   : > { %2670 = vmatprep.subr.bf16.mxu0 %v2855_v12  ;;  %p3066_p3 = pnand %p3065_p2, %p3059_p13 }
  0x34   : > { %860 = vmatmul.mubr.bf16.vlgmr.msra.gmra.mxu0 %v2852_v21 }
  0x35   : > { %2671 = vmatpush3.bf16.msra.mxu0 %v2855_v12  ;;  %867 = vmatprep.mubr.bf16.mxu0 %v2856_v23 }
  0x36   : > { %2672 = vmatprep.subr.bf16.mxu0 %v2865_v16 }
  0x37   : > { %2695 = vmatmul.mubr.msk.bf16.gmra.mxu1 %vm778_vm0, %v2894_v32 }
  0x38   : > { %2698 = vmatprep.mubr.msk.bf16.mxu1 %vm778_vm0, %v2901_v33 }
  0x39   : > { %2673 = vmatpush3.bf16.msra.mxu0 %v2865_v16 }
  0x3c   : > { %868 = vmatmul.mubr.bf16.gmra.mxu0 %v2858_v26 }
  0x3d   : > { %875 = vmatprep.mubr.bf16.mxu0 %v2859_v27 }
  0x3f   : > { %2699 = vmatmul.mubr.msk.bf16.gmra.mxu1 %vm778_vm0, %v2902_v36 }
  0x40   : > { %2702 = vmatprep.mubr.msk.bf16.mxu1 %vm778_vm0, %v2909_v37 }
  0x44   : > { %876 = vmatmul.mubr.bf16.gmra.mxu0 %v2861_v30 }
  0x45   : > { %883 = vmatprep.mubr.bf16.mxu0 %v2862_v31 }
  0x47   : > { %2703 = vmatmul.mubr.msk.bf16.gmra.mxu1 %vm778_vm0, %v2910_v40 }
  0x4c   : > { %884 = vmatmul.mubr.bf16.gmra.mxu0 %v2864_v34  ;;  %v2919_v34 = vld [vmem:[%s4265_s3] sm:$0xff]  }
  0x4d   : > { %891 = vmatprep.mubr.bf16.mxu0 %v2866_v35  ;;  %2708 = vmatprep.subr.bf16.mxu1 %v2919_v34 }
  0x4e   : > { %2709 = vmatpush3.bf16.msra.mxu1 %v2919_v34 }
  0x54   : > { %892 = vmatmul.mubr.bf16.gmra.mxu0 %v2868_v38 }
  0x55   : > { %899 = vmatprep.mubr.bf16.mxu0 %v2871_v39 }
  0x5c   : > { %900 = vmatmul.mubr.bf16.gmra.mxu0 %v2873_v41 }
  0x5d   : > { %907 = vmatprep.mubr.bf16.mxu0 %v2874_v42 }
  0x64   : > { %908 = vmatmul.mubr.bf16.gmra.mxu0 %v2876_v43 }
  0x65   : > { %915 = vmatprep.mubr.bf16.mxu0 %v2879_v44 }
  0x6c   : > { %916 = vmatmul.mubr.bf16.gmra.mxu0 %v2881_v45 }
  0x6d   : > { %923 = vmatprep.mubr.bf16.mxu0 %v2882_v46 }
  0x74   : > { %924 = vmatmul.mubr.bf16.gmra.mxu0 %v2884_v47 }
  0x75   : > { %931 = vmatprep.mubr.bf16.mxu0 %v2887_v48 }
  0x7c   : > { %932 = vmatmul.mubr.bf16.gmra.mxu0 %v2889_v49 }
  0x7d   : > { %939 = vmatprep.mubr.bf16.mxu0 %v2890_v50 }
  0x84   : > { %940 = vmatmul.mubr.bf16.gmra.mxu0 %v2892_v51 }
  0x85   : > { %947 = vmatprep.mubr.bf16.mxu0 %v2895_v52 }
  0x8c   : > { %948 = vmatmul.mubr.bf16.gmra.mxu0 %v2897_v53 }
  0x8d   : > { %955 = vmatprep.mubr.bf16.mxu0 %v2898_v54 }
  0x94   : > { %956 = vmatmul.mubr.bf16.gmra.mxu0 %v2900_v55 }
  0x95   : > { %963 = vmatprep.mubr.bf16.mxu0 %v2903_v56 }
  0x9c   : > { %964 = vmatmul.mubr.bf16.gmra.mxu0 %v2905_v57 }
  0x9d   : > { %971 = vmatprep.mubr.bf16.mxu0 %v2906_v58 }
  0xa4   : > { %972 = vmatmul.mubr.bf16.gmra.mxu0 %v2908_v59 }
  0xa5   : > { %979 = vmatprep.mubr.bf16.mxu0 %v2911_v60 }
  0xac   : > { %980 = vmatmul.mubr.bf16.gmra.mxu0 %v2913_v61 }
  0xad   : > { %2674 = vmatprep.mubr.msk.bf16.mxu0 %vm778_vm0, %v2914_v62 }
  0xb4   : > { %2675 = vmatmul.mubr.msk.bf16.vlgmr.msra.gmra.mxu0 %vm778_vm0, %v2915_v63 }
  0xb5   : > { %2678 = vmatprep.mubr.msk.bf16.mxu0 %vm778_vm0, %v2916_v0 }
  0xbc   : > { %2679 = vmatmul.mubr.msk.bf16.gmra.mxu0 %vm778_vm0, %v2917_v1 }
  0xdf   : > { %v2684_v23 = vpop.f32.mrf.mxu1 }
  0xe1   : > { %v1054_v27 = vpop.f32.mrf.mxu1 }
  0xe3   : > { %v2685_v31 = vpop.f32.mrf.mxu1 }
  0xe5   : > { %v1057_v37 = vpop.f32.mrf.mxu1 }
  0xe7   : > { %v2688_v47 = vpop.f32.mrf.mxu1 }
  0xe9   : > { %v1070_v57 = vpop.f32.mrf.mxu1 }
  0xf4   : > { %v2514_v2 = vpop.f32.mrf.mxu0 }
  0xf6   : > { %v2515_v3 = vpop.f32.mrf.mxu0 }
  0xf7   : > { %v3337_v4 = vadd.f32 %v2515_v3, %v2514_v2  ;;  %v2689_v3 = vpop.f32.mrf.mxu1 }
  0xf8   : > { %v2517_v5 = vpop.f32.mrf.mxu0 }
  0xfa   : > { %v2518_v6 = vpop.f32.mrf.mxu0 }
  0xfb   : > { %v3339_v7 = vadd.f32 %v2518_v6, %v2517_v5 }
  0xfc   : > { %v2520_v8 = vpop.f32.mrf.mxu0 }
  0xfe   : > { %v2521_v10 = vpop.f32.mrf.mxu0 }
  0xff   : > { %v3344_v11 = vadd.f32 %v2521_v10, %v2520_v8 }
 0x100   : > { %v2523_v12 = vpop.f32.mrf.mxu0 }
 0x102   : > { %v2524_v13 = vpop.f32.mrf.mxu0 }
 0x103   : > { %v3346_v14 = vadd.f32 %v2524_v13, %v2523_v12 }
 0x104   : > { %v2526_v15 = vpop.f32.mrf.mxu0 }
 0x106   : > { %v2527_v16 = vpop.f32.mrf.mxu0 }
 0x107   : > { %v3348_v17 = vadd.f32 %v2527_v16, %v2526_v15  ;;  %v1073_v16 = vpop.f32.mrf.mxu1 }
 0x108   : > { %v2529_v18 = vpop.f32.mrf.mxu0 }
 0x10a   : > { %v2530_v19 = vpop.f32.mrf.mxu0 }
 0x10b   : > { %v3350_v20 = vadd.f32 %v2530_v19, %v2529_v18 }
 0x10c   : > { %v2532_v21 = vpop.f32.mrf.mxu0 }
 0x10e   : > { %v2533_v22 = vpop.f32.mrf.mxu0 }
 0x10f   : > { %v3352_v24 = vadd.f32 %v2533_v22, %v2532_v21 }
 0x110   : > { %v2535_v25 = vpop.f32.mrf.mxu0 }
 0x112   : > { %v2536_v26 = vpop.f32.mrf.mxu0 }
 0x113   : > { %v3354_v28 = vadd.f32 %v2536_v26, %v2535_v25 }
 0x114   : > { %v2538_v29 = vpop.f32.mrf.mxu0 }
 0x116   : > { %v2539_v30 = vpop.f32.mrf.mxu0 }
 0x117   : > { %v2540_v32 = vadd.f32 %v2539_v30, %v2538_v29  ;;  %v3390_v30 = vpop.f32.mrf.mxu1 }
 0x118   : > { %v2541_v33 = vpop.f32.mrf.mxu0 }
 0x119   : > { %v3359_v35 = vadd.f32 %v2540_v32, %v1054_v27 }
 0x11a   : > { %v2542_v36 = vpop.f32.mrf.mxu0 }
 0x11b   : > { %v1189_v38 = vmul.f32 0.044715, %v3359_v35  ;;  %v2543_v39 = vadd.f32 %v2542_v36, %v2541_v33 }
 0x11c   : > { %v2544_v40 = vpop.f32.mrf.mxu0 }
 0x11d   : > { %v1221_v41 = vmul.f32 %v1189_v38, %v3359_v35  ;;  %v3363_v42 = vadd.f32 %v2543_v39, %v1057_v37 }
 0x11e   : > { %v2545_v43 = vpop.f32.mrf.mxu0 }
 0x11f   : > { %v1253_v44 = vmul.f32 %v1221_v41, %v3359_v35  ;;  %v1190_v45 = vmul.f32 0.044715, %v3363_v42  ;;  %v2546_v46 = vadd.f32 %v2545_v43, %v2544_v40  ;;  %v1086_v43 = vpop.f32.mrf.mxu1 }
 0x120   : > { %v2547_v48 = vpop.f32.mrf.mxu0 }
 0x121   : > { %v1285_v49 = vadd.f32 %v1253_v44, %v3359_v35  ;;  %v1222_v50 = vmul.f32 %v1190_v45, %v3363_v42  ;;  %v3369_v51 = vadd.f32 %v2684_v23, %v2546_v46 }
 0x122   : > { %v2548_v52 = vpop.f32.mrf.mxu0 }
 0x123   : > { %v1317_v53 = vmul.f32 0.7978846, %v1285_v49  ;;  %v1254_v54 = vmul.f32 %v1222_v50, %v3363_v42  ;;  %v1191_v55 = vmul.f32 0.044715, %v3369_v51  ;;  %v2549_v56 = vadd.f32 %v2548_v52, %v2547_v48 }
 0x124   : > { %v2550_v58 = vpop.f32.mrf.mxu0  ;;  %v1157_v50 = vmul.f32 0.5, %v3359_v35  ;;  %v1158_v52 = vmul.f32 0.5, %v3363_v42 }
 0x125   : > { %2928 = vtanh.f32 %v1317_v53  ;;  %v1286_v59 = vadd.f32 %v1254_v54, %v3363_v42  ;;  %v1223_v60 = vmul.f32 %v1191_v55, %v3369_v51  ;;  %v3375_v61 = vadd.f32 %v2685_v31, %v2549_v56 }
 0x126   : > { %v2551_v62 = vpop.f32.mrf.mxu0 }
 0x127   : > { %v1318_v63 = vmul.f32 0.7978846, %v1286_v59  ;;  %v1255_v0 = vmul.f32 %v1223_v60, %v3369_v51  ;;  %v1192_v1 = vmul.f32 0.044715, %v3375_v61  ;;  %v2552_v2 = vadd.f32 %v2551_v62, %v2550_v58  ;;  %v2693_v58 = vpop.f32.mrf.mxu1 }
 0x128   : > { %v2553_v5 = vpop.f32.mrf.mxu0 }
 0x129   : > { %2930 = vtanh.f32 %v1318_v63  ;;  %v1287_v6 = vadd.f32 %v1255_v0, %v3369_v51  ;;  %v1224_v8 = vmul.f32 %v1192_v1, %v3375_v61  ;;  %v3381_v9 = vadd.f32 %v2552_v2, %v1070_v57  ;;  %v370_v1 = vld [vmem:[%s3409_s23 + $0x40] sm:$0xff]  ;;  %v371_v2 = vld [vmem:[%s3409_s23 + $0x48] sm:$0xff] }
 0x12a   : > { %v2554_v10 = vpop.f32.mrf.mxu0 }
 0x12b   : > { %v1319_v12 = vmul.f32 0.7978846, %v1287_v6  ;;  %v1256_v13 = vmul.f32 %v1224_v8, %v3375_v61  ;;  %v1193_v15 = vmul.f32 0.044715, %v3381_v9  ;;  %v2555_v18 = vadd.f32 %v2554_v10, %v2553_v5 }
 0x12c   : > { %v2556_v19 = vpop.f32.mrf.mxu0 }
 0x12d   : > { %2932 = vtanh.f32 %v1319_v12  ;;  %v1288_v21 = vadd.f32 %v1256_v13, %v3375_v61  ;;  %v1225_v22 = vmul.f32 %v1193_v15, %v3381_v9  ;;  %v3387_v23 = vadd.f32 %v2555_v18, %v1073_v16  ;;  %v1089_v13 = vpop.f32.mrf.mxu1 }
 0x12e   : > { %v2557_v25 = vpop.f32.mrf.mxu0  ;;  %v1159_v15 = vmul.f32 0.5, %v3369_v51 }
 0x12f   : > { %v1320_v26 = vmul.f32 0.7978846, %v1288_v21  ;;  %v1257_v27 = vmul.f32 %v1225_v22, %v3381_v9  ;;  %v2558_v29 = vadd.f32 %v2557_v25, %v2556_v19  ;;  %v1194_v31 = vmul.f32 0.044715, %v3387_v23 }
 0x130   : > { %v2559_v32 = vpop.f32.mrf.mxu0 }
 0x131   : > { %2934 = vtanh.f32 %v1320_v26  ;;  %v1289_v33 = vadd.f32 %v1257_v27, %v3381_v9  ;;  %v3394_v34 = vadd.f32 %v2688_v47, %v2558_v29  ;;  %v1226_v37 = vmul.f32 %v1194_v31, %v3387_v23 }
 0x132   : > { %v2929_v36 = vpop.eup %2928  ;;  %v2560_v38 = vpop.f32.mrf.mxu0 }
 0x133   : > { %v1321_v39 = vmul.f32 0.7978846, %v1289_v33  ;;  %v1195_v40 = vmul.f32 0.044715, %v3394_v34  ;;  %v2561_v41 = vadd.f32 %v2560_v38, %v2559_v32  ;;  %v1258_v44 = vmul.f32 %v1226_v37, %v3387_v23 }
 0x134   : > { %v2562_v45 = vpop.f32.mrf.mxu0  ;;  %v1381_v46 = vadd.f32 1.0, %v2929_v36  ;;  %v1160_v32 = vmul.f32 0.5, %v3375_v61 }
 0x135   : > { %2936 = vtanh.f32 %v1321_v39  ;;  %v1227_v48 = vmul.f32 %v1195_v40, %v3394_v34  ;;  %v3401_v49 = vadd.f32 %v2689_v3, %v2561_v41  ;;  %v1290_v53 = vadd.f32 %v1258_v44, %v3387_v23  ;;  %v3434_v39 = vpop.f32.mrf.mxu1  ;;  %v372_v40 = vld [vmem:[%s3409_s23 + $0x50] sm:$0xff] }
 0x136   : > { %v2931_v47 = vpop.eup %2930  ;;  %v2563_v54 = vpop.f32.mrf.mxu0  ;;  %v1413_v42 = vmul.f32 %v1381_v46, %v1157_v50 }
 0x137   : > { %v1259_v55 = vmul.f32 %v1227_v48, %v3394_v34  ;;  %v1196_v56 = vmul.f32 0.044715, %v3401_v49  ;;  %v2564_v57 = vadd.f32 %v2563_v54, %v2562_v45  ;;  %v1382_v59 = vadd.f32 1.0, %v2931_v47  ;;  %v373_v45 = vld [vmem:[%s3409_s23 + $0x58] sm:$0xff] }
 0x138   : > { %v1322_v35 = vmul.f32 0.7978846, %v1290_v53  ;;  %v2565_v60 = vpop.f32.mrf.mxu0  ;;  %v3422_v19 = vadd.f32 %v1413_v42, %v370_v1  ;;  %v1161_v1 = vmul.f32 0.5, %v3381_v9 }
 0x139   : > { %v1291_v62 = vadd.f32 %v1259_v55, %v3394_v34  ;;  %v1228_v63 = vmul.f32 %v1196_v56, %v3401_v49  ;;  %v3415_v0 = vadd.f32 %v2564_v57, %v1086_v43  ;;  %v1414_v3 = vmul.f32 %v1382_v59, %v1158_v52  ;;  %v1102_v57 = vpop.f32.mrf.mxu1 }
 0x13a   : > { %v2933_v5 = vpop.eup %2932  ;;  %2938 = vtanh.f32 %v1322_v35  ;;  %v2566_v6 = vpop.f32.mrf.mxu0 }
 0x13b   : > { %v1323_v8 = vmul.f32 0.7978846, %v1291_v62  ;;  %v1260_v10 = vmul.f32 %v1228_v63, %v3401_v49  ;;  %v1197_v12 = vmul.f32 0.044715, %v3415_v0  ;;  %v2567_v16 = vadd.f32 %v2566_v6, %v2565_v60 }
 0x13c   : > { %v2568_v18 = vpop.f32.mrf.mxu0  ;;  %v3424_v21 = vadd.f32 %v1414_v3, %v371_v2  ;;  %v1383_v22 = vadd.f32 1.0, %v2933_v5 }
 0x13d   : > { %2940 = vtanh.f32 %v1323_v8  ;;  %v1292_v25 = vadd.f32 %v1260_v10, %v3401_v49  ;;  %v1229_v26 = vmul.f32 %v1197_v12, %v3415_v0  ;;  %v3428_v29 = vadd.f32 %v2567_v16, %v1089_v13  ;;  %v2697_v12 = vpop.f32.mrf.mxu1 }
 0x13e   : > { %v2935_v27 = vpop.eup %2934  ;;  %v2569_v31 = vpop.f32.mrf.mxu0  ;;  %v1473_v51 = vpack.c.bf16 %v3424_v21, %v3422_v19  ;;  %v1415_v33 = vmul.f32 %v1383_v22, %v1159_v15  ;;  %v2923_v21 = vld [vmem:[%s4267_s5 + $0x20] sm:$0xff]  }
 0x13f   : > { %v1324_v36 = vmul.f32 0.7978846, %v1292_v25  ;;  %v1261_v37 = vmul.f32 %v1229_v26, %v3415_v0  ;;  %v2570_v38 = vadd.f32 %v2569_v31, %v2568_v18  ;;  %v1384_v41 = vadd.f32 1.0, %v2935_v27  ;;  %v374_v26 = vld [vmem:[%s3409_s23 + $0x60] sm:$0xff]  ;;  %v375_v27 = vld [vmem:[%s3409_s23 + $0x68] sm:$0xff] }
 0x140   : > { %v1198_v43 = vmul.f32 0.044715, %v3428_v29  ;;  %v2571_v44 = vpop.f32.mrf.mxu0  ;;  %v3444_v53 = vadd.f32 %v1415_v33, %v372_v40  ;;  %v1163_v40 = vmul.f32 0.5, %v3394_v34 }
 0x141   : > { %2942 = vtanh.f32 %v1324_v36  ;;  %v1293_v46 = vadd.f32 %v1261_v37, %v3415_v0  ;;  %v3441_v48 = vadd.f32 %v3390_v30, %v2570_v38  ;;  %v1416_v61 = vmul.f32 %v1384_v41, %v1160_v32  ;;  %v1105_v38 = vpop.f32.mrf.mxu1 }
 0x142   : > { %v2937_v47 = vpop.eup %2936  ;;  %v1230_v50 = vmul.f32 %v1198_v43, %v3428_v29  ;;  %v2572_v52 = vpop.f32.mrf.mxu0 }
 0x143   : > { %v1325_v54 = vmul.f32 0.7978846, %v1293_v46  ;;  %v1199_v55 = vmul.f32 0.044715, %v3441_v48  ;;  %v2573_v56 = vadd.f32 %v2572_v52, %v2571_v44  ;;  %v3447_v59 = vadd.f32 %v1416_v61, %v373_v45 }
 0x144   : > { %v1262_v35 = vmul.f32 %v1230_v50, %v3428_v29  ;;  %v2574_v60 = vpop.f32.mrf.mxu0  ;;  %v1385_v42 = vadd.f32 1.0, %v2937_v47 }
 0x145   : > { %2944 = vtanh.f32 %v1325_v54  ;;  %v1231_v30 = vmul.f32 %v1199_v55, %v3441_v48  ;;  %v3451_v62 = vadd.f32 %v2693_v58, %v2573_v56  ;;  %v1474_v63 = vpack.c.bf16 %v3447_v59, %v3444_v53  ;;  %v2925_v53 = vld [vmem:[%s4267_s5 + $0x10] sm:$0xff]   ;;  %v2926_v59 = vld [vmem:[%s4267_s5 + $0x8] sm:$0xff]  }
 0x146   : > { %v1294_v2 = vadd.f32 %v1262_v35, %v3428_v29  ;;  %v2575_v3 = vpop.f32.mrf.mxu0  ;;  %v1162_v58 = vmul.f32 0.5, %v3387_v23  ;;  %v1417_v18 = vmul.f32 %v1385_v42, %v1161_v1  ;;  %v1164_v55 = vmul.f32 0.5, %v3401_v49  ;;  %v3481_v42 = vpop.f32.mrf.mxu1 }
 0x147   : > { %v2939_v5 = vpop.eup %2938  ;;  %v1263_v6 = vmul.f32 %v1231_v30, %v3441_v48  ;;  %v1200_v8 = vmul.f32 0.044715, %v3451_v62  ;;  %v2576_v10 = vadd.f32 %v2575_v3, %v2574_v60  ;;  %v376_v30 = vld [vmem:[%s3409_s23 + $0x70] sm:$0xff] }
 0x148   : > { %v1326_v13 = vmul.f32 0.7978846, %v1294_v2  ;;  %v2577_v15 = vpop.f32.mrf.mxu0  ;;  %v1386_v16 = vadd.f32 1.0, %v2939_v5  ;;  %v3469_v44 = vadd.f32 %v1417_v18, %v374_v26  ;;  %v377_v5 = vld [vmem:[%s3409_s23 + $0x78] sm:$0xff] }
 0x149   : > { %v1295_v9 = vadd.f32 %v1263_v6, %v3441_v48  ;;  %v1232_v22 = vmul.f32 %v1200_v8, %v3451_v62  ;;  %v3462_v25 = vadd.f32 %v2576_v10, %v1102_v57 }
 0x14a   : > { %v2941_v31 = vpop.eup %2940  ;;  %2946 = vtanh.f32 %v1326_v13  ;;  %v2578_v32 = vpop.f32.mrf.mxu0  ;;  %v1418_v33 = vmul.f32 %v1386_v16, %v1162_v58 }
 0x14b   : > { %v1327_v36 = vmul.f32 0.7978846, %v1295_v9  ;;  %v1264_v37 = vmul.f32 %v1232_v22, %v3451_v62  ;;  %v1201_v23 = vmul.f32 0.044715, %v3462_v25  ;;  %v2579_v41 = vadd.f32 %v2578_v32, %v2577_v15  ;;  %v1118_v22 = vpop.f32.mrf.mxu1 }
 0x14c   : > { %v2580_v43 = vpop.f32.mrf.mxu0  ;;  %v3471_v45 = vadd.f32 %v1418_v33, %v375_v27  ;;  %v1387_v46 = vadd.f32 1.0, %v2941_v31 }
 0x14d   : > { %2948 = vtanh.f32 %v1327_v36  ;;  %v1296_v61 = vadd.f32 %v1264_v37, %v3451_v62  ;;  %v1233_v47 = vmul.f32 %v1201_v23, %v3462_v25  ;;  %v3475_v52 = vadd.f32 %v2579_v41, %v1105_v38 }
 0x14e   : > { %v2943_v50 = vpop.eup %2942  ;;  %v2581_v54 = vpop.f32.mrf.mxu0  ;;  %v1475_v34 = vpack.c.bf16 %v3471_v45, %v3469_v44  ;;  %v1419_v56 = vmul.f32 %v1387_v46, %v1163_v40  ;;  %v1165_v37 = vmul.f32 0.5, %v3415_v0  ;;  %v3802_v44 = vld [vmem:[%s4266_s4] ss:$0 sm:$0xff] }
 0x14f   : > { %v1328_v57 = vmul.f32 0.7978846, %v1296_v61  ;;  %v1265_v35 = vmul.f32 %v1233_v47, %v3462_v25  ;;  %v2582_v60 = vadd.f32 %v2581_v54, %v2580_v43  ;;  %v1388_v1 = vadd.f32 1.0, %v2943_v50  ;;  %v2701_v61 = vpop.f32.mrf.mxu1 }
 0x150   : > { %v1202_v2 = vmul.f32 0.044715, %v3475_v52  ;;  %v2583_v3 = vpop.f32.mrf.mxu0  ;;  %v3491_v15 = vadd.f32 %v1419_v56, %v376_v30  ;;  %v1166_v47 = vmul.f32 0.5, %v3428_v29  ;;  %v379_v30 = vld [vmem:[%s3409_s23 + $0x88] sm:$0xff] }
 0x151   : > { %2950 = vtanh.f32 %v1328_v57  ;;  %v1297_v6 = vadd.f32 %v1265_v35, %v3462_v25  ;;  %v3488_v8 = vadd.f32 %v3434_v39, %v2582_v60  ;;  %v1420_v49 = vmul.f32 %v1388_v1, %v1164_v55  ;;  %v378_v60 = vld [vmem:[%s3409_s23 + $0x80] sm:$0xff] }
 0x152   : > { %v2945_v10 = vpop.eup %2944  ;;  %v1234_v58 = vmul.f32 %v1202_v2, %v3475_v52  ;;  %v2584_v13 = vpop.f32.mrf.mxu0 }
 0x153   : > { %v1329_v16 = vmul.f32 0.7978846, %v1297_v6  ;;  %v1203_v18 = vmul.f32 0.044715, %v3488_v8  ;;  %v2585_v9 = vadd.f32 %v2584_v13, %v2583_v3  ;;  %v3494_v26 = vadd.f32 %v1420_v49, %v377_v5  ;;  %v1121_v49 = vpop.f32.mrf.mxu1 }
 0x154   : > { %v1266_v27 = vmul.f32 %v1234_v58, %v3475_v52  ;;  %v2586_v31 = vpop.f32.mrf.mxu0  ;;  %v1389_v32 = vadd.f32 1.0, %v2945_v10  ;;  %v1167_v10 = vmul.f32 0.5, %v3441_v48 }
 0x155   : > { %2952 = vtanh.f32 %v1329_v16  ;;  %v1235_v39 = vmul.f32 %v1203_v18, %v3488_v8  ;;  %v3498_v33 = vadd.f32 %v2697_v12, %v2585_v9  ;;  %v1476_v36 = vpack.c.bf16 %v3494_v26, %v3491_v15  ;;  %v3509_v12 = vld [vmem:[%s4267_s5 + $0x38] sm:$0xff]  }
 0x156   : > { %v1298_v23 = vadd.f32 %v1266_v27, %v3475_v52  ;;  %v2587_v38 = vpop.f32.mrf.mxu0  ;;  %v1421_v55 = vmul.f32 %v1389_v32, %v1165_v37  ;;  %2742 = vmatprep.subr.bf16.mxu1 %v3509_v12  ;;  %v1168_v37 = vmul.f32 0.5, %v3451_v62 }
 0x157   : > { %v2947_v40 = vpop.eup %2946  ;;  %v1267_v41 = vmul.f32 %v1235_v39, %v3488_v8  ;;  %v1204_v43 = vmul.f32 0.044715, %v3498_v33  ;;  %v2588_v46 = vadd.f32 %v2587_v38, %v2586_v31 }
 0x158   : > { %v1330_v0 = vmul.f32 0.7978846, %v1298_v23  ;;  %v2589_v50 = vpop.f32.mrf.mxu0  ;;  %v1390_v54 = vadd.f32 1.0, %v2947_v40  ;;  %v3522_v16 = vadd.f32 %v1421_v55, %v378_v60 }
 0x159   : > { %v1299_v56 = vadd.f32 %v1267_v41, %v3488_v8  ;;  %v1236_v57 = vmul.f32 %v1204_v43, %v3498_v33  ;;  %v3514_v35 = vadd.f32 %v2588_v46, %v1118_v22  ;;  %v3534_v43 = vpop.f32.mrf.mxu1  ;;  %v380_v46 = vld [vmem:[%s3409_s23 + $0x90] sm:$0xff] }
 0x15a   : > { %v2949_v1 = vpop.eup %2948  ;;  %2954 = vtanh.f32 %v1330_v0  ;;  %v2590_v2 = vpop.f32.mrf.mxu0  ;;  %v1422_v3 = vmul.f32 %v1390_v54, %v1166_v47  ;;  %v381_v54 = vld [vmem:[%s3409_s23 + $0x98] sm:$0xff] }
 0x15b   : > { %v1331_v5 = vmul.f32 0.7978846, %v1299_v56  ;;  %v1268_v29 = vmul.f32 %v1236_v57, %v3498_v33  ;;  %v1205_v6 = vmul.f32 0.044715, %v3514_v35  ;;  %v2591_v58 = vadd.f32 %v2590_v2, %v2589_v50 }
 0x15c   : > { %v2592_v13 = vpop.f32.mrf.mxu0  ;;  %v3524_v18 = vadd.f32 %v1422_v3, %v379_v30  ;;  %v1391_v9 = vadd.f32 1.0, %v2949_v1 }
 0x15d   : > { %2956 = vtanh.f32 %v1331_v5  ;;  %v1300_v22 = vadd.f32 %v1268_v29, %v3498_v33  ;;  %v1237_v27 = vmul.f32 %v1205_v6, %v3514_v35  ;;  %v3528_v32 = vadd.f32 %v2591_v58, %v1121_v49  ;;  %v1134_v5 = vpop.f32.mrf.mxu1 }
 0x15e   : > { %v2951_v31 = vpop.eup %2950  ;;  %v2593_v39 = vpop.f32.mrf.mxu0  ;;  %v1477_v48 = vpack.c.bf16 %v3524_v18, %v3522_v16  ;;  %v1423_v23 = vmul.f32 %v1391_v9, %v1167_v10 }
 0x15f   : > { %v1332_v38 = vmul.f32 0.7978846, %v1300_v22  ;;  %v1269_v40 = vmul.f32 %v1237_v27, %v3514_v35  ;;  %v2594_v41 = vadd.f32 %v2593_v39, %v2592_v13  ;;  %v1392_v47 = vadd.f32 1.0, %v2951_v31 }
 0x160   : > { %v1206_v0 = vmul.f32 0.044715, %v3528_v32  ;;  %v2595_v50 = vpop.f32.mrf.mxu0  ;;  %v3543_v30 = vadd.f32 %v1423_v23, %v380_v46  ;;  %v1169_v13 = vmul.f32 0.5, %v3462_v25 }
 0x161   : > { %2958 = vtanh.f32 %v1332_v38  ;;  %v3540_v55 = vadd.f32 %v3481_v42, %v2594_v41  ;;  %v1424_v56 = vmul.f32 %v1392_v47, %v1168_v37  ;;  %v1301_v1 = vadd.f32 %v1269_v40, %v3514_v35  ;;  %v2705_v38 = vpop.f32.mrf.mxu1 }
 0x162   : > { %v2953_v57 = vpop.eup %2952  ;;  %v1238_v62 = vmul.f32 %v1206_v0, %v3528_v32  ;;  %v2596_v60 = vpop.f32.mrf.mxu0 }
 0x163   : > { %v1207_v2 = vmul.f32 0.044715, %v3540_v55  ;;  %v2597_v3 = vadd.f32 %v2596_v60, %v2595_v50  ;;  %v3547_v29 = vadd.f32 %v1424_v56, %v381_v54  ;;  %v1393_v42 = vadd.f32 1.0, %v2953_v57  ;;  %v382_v50 = vld [vmem:[%s3409_s23 + $0xa0] sm:$0xff]  ;;  %v383_v54 = vld [vmem:[%s3409_s23 + $0xa8] sm:$0xff] }
 0x164   : > { %v1270_v6 = vmul.f32 %v1238_v62, %v3528_v32  ;;  %v2598_v49 = vpop.f32.mrf.mxu0  ;;  %v1333_v39 = vmul.f32 0.7978846, %v1301_v1 }
 0x165   : > { %v3550_v10 = vadd.f32 %v2701_v61, %v2597_v3  ;;  %v1478_v58 = vpack.c.bf16 %v3547_v29, %v3543_v30  ;;  %v1239_v22 = vmul.f32 %v1207_v2, %v3540_v55  ;;  %v1170_v61 = vmul.f32 0.5, %v3475_v52  ;;  %v1137_v2 = vpop.f32.mrf.mxu1 }
 0x166   : > { %v1302_v9 = vadd.f32 %v1270_v6, %v3528_v32  ;;  %v2599_v27 = vpop.f32.mrf.mxu0  ;;  %v1425_v47 = vmul.f32 %v1393_v42, %v1169_v13 }
 0x167   : > { %v2955_v31 = vpop.eup %2954  ;;  %v1208_v37 = vmul.f32 0.044715, %v3550_v10  ;;  %v2600_v23 = vadd.f32 %v2599_v27, %v2598_v49  ;;  %v1271_v57 = vmul.f32 %v1239_v22, %v3540_v55 }
 0x168   : > { %v1334_v40 = vmul.f32 0.7978846, %v1302_v9  ;;  %v2601_v41 = vpop.f32.mrf.mxu0  ;;  %v1394_v46 = vadd.f32 1.0, %v2955_v31  ;;  %v3567_v49 = vadd.f32 %v1425_v47, %v382_v50  ;;  %v1171_v9 = vmul.f32 0.5, %v3488_v8 }
 0x169   : > { %v1240_v25 = vmul.f32 %v1208_v37, %v3550_v10  ;;  %v3560_v0 = vadd.f32 %v2600_v23, %v1134_v5  ;;  %v1303_v27 = vadd.f32 %v1271_v57, %v3540_v55  ;;  %v1172_v23 = vmul.f32 0.5, %v3498_v33  ;;  %v384_v57 = vld [vmem:[%s3409_s23 + $0xb0] sm:$0xff] }
 0x16a   : > { %v2957_v56 = vpop.eup %2956  ;;  %2960 = vtanh.f32 %v1334_v40  ;;  %v2602_v62 = vpop.f32.mrf.mxu0  ;;  %v1426_v60 = vmul.f32 %v1394_v46, %v1170_v61 }
 0x16b   : > { %2962 = vtanh.f32 %v1333_v39  ;;  %v1272_v1 = vmul.f32 %v1240_v25, %v3550_v10  ;;  %v1209_v52 = vmul.f32 0.044715, %v3560_v0  ;;  %v2603_v3 = vadd.f32 %v2602_v62, %v2601_v41  ;;  %v385_v25 = vld [vmem:[%s3409_s23 + $0xb8] sm:$0xff] }
 0x16c   : > { %v2604_v6 = vpop.f32.mrf.mxu0  ;;  %v3569_v5 = vadd.f32 %v1426_v60, %v383_v54  ;;  %v1395_v42 = vadd.f32 1.0, %v2957_v56  ;;  %v1335_v60 = vmul.f32 0.7978846, %v1303_v27 }
 0x16d   : > { %v1241_v13 = vmul.f32 %v1209_v52, %v3560_v0  ;;  %v3574_v31 = vadd.f32 %v2603_v3, %v1137_v2  ;;  %v1304_v61 = vadd.f32 %v1272_v1, %v3550_v10 }
 0x16e   : > { %v2959_v22 = vpop.eup %2958  ;;  %v2605_v39 = vpop.f32.mrf.mxu0  ;;  %v1479_v37 = vpack.c.bf16 %v3569_v5, %v3567_v49  ;;  %v1427_v50 = vmul.f32 %v1395_v42, %v1171_v9  ;;  %2964 = vtanh.f32 %v1335_v60 }
 0x16f   : > { %v1273_v40 = vmul.f32 %v1241_v13, %v3560_v0  ;;  %v2606_v41 = vadd.f32 %v2605_v39, %v2604_v6  ;;  %v1396_v46 = vadd.f32 1.0, %v2959_v22  ;;  %v1210_v8 = vmul.f32 0.044715, %v3574_v31 }
 0x170   : > { %v2607_v47 = vpop.f32.mrf.mxu0  ;;  %v1336_v52 = vmul.f32 0.7978846, %v1304_v61  ;;  %v3593_v22 = vadd.f32 %v1427_v50, %v384_v57  ;;  %v1174_v61 = vmul.f32 0.5, %v3528_v32 }
 0x171   : > { %v1305_v54 = vadd.f32 %v1273_v40, %v3560_v0  ;;  %v3585_v56 = vadd.f32 %v3534_v43, %v2606_v41  ;;  %v1428_v62 = vmul.f32 %v1396_v46, %v1172_v23  ;;  %v1242_v33 = vmul.f32 %v1210_v8, %v3574_v31 }
 0x172   : > { %v2608_v1 = vpop.f32.mrf.mxu0  ;;  %v1173_v43 = vmul.f32 0.5, %v3514_v35  ;;  %2966 = vtanh.f32 %v1336_v52 }
 0x173   : > { %v1211_v2 = vmul.f32 0.044715, %v3585_v56  ;;  %v2609_v3 = vadd.f32 %v2608_v1, %v2607_v47  ;;  %v3590_v6 = vadd.f32 %v1428_v62, %v385_v25  ;;  %v1337_v13 = vmul.f32 0.7978846, %v1305_v54 }
 0x174   : > { %v1274_v42 = vmul.f32 %v1242_v33, %v3574_v31  ;;  %v2676_v9 = vpop.f32.mrf.mxu0 }
 0x175   : > { %v1243_v39 = vmul.f32 %v1211_v2, %v3585_v56  ;;  %v3597_v27 = vadd.f32 %v2705_v38, %v2609_v3  ;;  %v3600_v23 = vadd.f32 %v2676_v9, %v3344_v11  ;;  %v1480_v46 = vpack.c.bf16 %v3590_v6, %v3593_v22 }
 0x176   : > { %v1306_v40 = vadd.f32 %v1274_v42, %v3574_v31  ;;  %v1022_v41 = vpop.f32.mrf.mxu0  ;;  %2968 = vtanh.f32 %v1337_v13  ;;  %v3620_v2 = vmul.f32 0.5, %v3540_v55 }
 0x177   : > { %v2961_v8 = vpop.eup %2960  ;;  %v1275_v35 = vmul.f32 %v1243_v39, %v3585_v56  ;;  %v1212_v47 = vmul.f32 0.044715, %v3597_v27  ;;  %v1183_v38 = vmul.f32 0.044715, %v3600_v23  ;;  %v3610_v32 = vadd.f32 %v3337_v4, %v1022_v41 }
 0x178   : > { %v2963_v25 = vpop.eup %2962  ;;  %v1338_v11 = vmul.f32 0.7978846, %v1306_v40  ;;  %v2677_v50 = vpop.f32.mrf.mxu0  ;;  %v1398_v54 = vadd.f32 1.0, %v2961_v8  ;;  %v3623_v4 = vmul.f32 0.5, %v3550_v10 }
 0x179   : > { %v1307_v57 = vadd.f32 %v1275_v35, %v3585_v56  ;;  %v1244_v62 = vmul.f32 %v1212_v47, %v3597_v27  ;;  %v1215_v60 = vmul.f32 %v1183_v38, %v3600_v23  ;;  %v3616_v33 = vadd.f32 %v2677_v50, %v3346_v14 }
 0x17a   : > { %2970 = vtanh.f32 %v1338_v11  ;;  %v1181_v1 = vmul.f32 0.044715, %v3610_v32  ;;  %v1025_v52 = vpop.f32.mrf.mxu0  ;;  %v1397_v9 = vadd.f32 1.0, %v2963_v25  ;;  %v1430_v55 = vmul.f32 %v1398_v54, %v1174_v61  ;;  %v387_v61 = vld [vmem:[%s3409_s23 + $0xc8] sm:$0xff] }
 0x17b   : > { %v1339_v3 = vmul.f32 0.7978846, %v1307_v57  ;;  %v1276_v13 = vmul.f32 %v1244_v62, %v3597_v27  ;;  %v1247_v42 = vmul.f32 %v1215_v60, %v3600_v23  ;;  %v1184_v39 = vmul.f32 0.044715, %v3616_v33 }
 0x17c   : > { %v1213_v14 = vmul.f32 %v1181_v1, %v3610_v32  ;;  %v3630_v40 = vadd.f32 %v3339_v7, %v1025_v52  ;;  %v2680_v41 = vpop.f32.mrf.mxu0  ;;  %v3638_v47 = vmul.f32 0.5, %v3560_v0  ;;  %v1429_v62 = vmul.f32 %v1397_v9, %v1173_v43 }
 0x17d   : > { %2972 = vtanh.f32 %v1339_v3  ;;  %v1308_v10 = vadd.f32 %v1276_v13, %v3597_v27  ;;  %v1279_v8 = vadd.f32 %v1247_v42, %v3600_v23  ;;  %v3635_v35 = vadd.f32 %v2680_v41, %v3352_v24  ;;  %v386_v3 = vld [vmem:[%s3409_s23 + $0xc0] sm:$0xff]  ;;  %v2965_v41 = vpop.eup %2964 }
 0x17e   : > { %v1245_v38 = vmul.f32 %v1213_v14, %v3610_v32  ;;  %v1216_v25 = vmul.f32 %v1184_v39, %v3616_v33  ;;  %v1182_v7 = vmul.f32 0.044715, %v3630_v40  ;;  %v1038_v11 = vpop.f32.mrf.mxu0  ;;  %v3656_v14 = vadd.f32 %v1430_v55, %v387_v61 }
 0x17f   : > { %v1340_v50 = vmul.f32 0.7978846, %v1308_v10  ;;  %v1311_v54 = vmul.f32 0.7978846, %v1279_v8  ;;  %v3645_v57 = vadd.f32 %v3348_v17, %v1038_v11  ;;  %v1187_v1 = vmul.f32 0.044715, %v3635_v35 }
 0x180   : > { %v1277_v24 = vadd.f32 %v1245_v38, %v3610_v32  ;;  %v1248_v60 = vmul.f32 %v1216_v25, %v3616_v33  ;;  %v1214_v0 = vmul.f32 %v1182_v7, %v3630_v40  ;;  %v2681_v52 = vpop.f32.mrf.mxu0  ;;  %v3663_v25 = vadd.f32 %v1429_v62, %v386_v3 }
 0x181   : > { %2974 = vtanh.f32 %v1340_v50  ;;  %v1185_v13 = vmul.f32 0.044715, %v3645_v57  ;;  %v3654_v42 = vadd.f32 %v2681_v52, %v3354_v28  ;;  %v1219_v10 = vmul.f32 %v1187_v1, %v3635_v35  ;;  %v2967_v28 = vpop.eup %2966 }
 0x182   : > { %2976 = vtanh.f32 %v1311_v54  ;;  %v1309_v17 = vmul.f32 0.7978846, %v1277_v24  ;;  %v1280_v43 = vadd.f32 %v1248_v60, %v3616_v33  ;;  %v1246_v9 = vmul.f32 %v1214_v0, %v3630_v40  ;;  %v1041_v39 = vpop.f32.mrf.mxu0 }
 0x183   : > { %v1217_v8 = vmul.f32 %v1185_v13, %v3645_v57  ;;  %v1188_v38 = vmul.f32 0.044715, %v3654_v42  ;;  %v3667_v11 = vadd.f32 %v3350_v20, %v1041_v39  ;;  %v2969_v61 = vpop.eup %2968  ;;  %v1251_v50 = vmul.f32 %v1219_v10, %v3635_v35 }
 0x184   : > { %2978 = vtanh.f32 %v1309_v17  ;;  %v1312_v55 = vmul.f32 0.7978846, %v1280_v43  ;;  %v1278_v7 = vadd.f32 %v1246_v9, %v3630_v40  ;;  %v1481_v62 = vpack.c.bf16 %v3656_v14, %v3663_v25  ;;  %v388_v9 = vld [vmem:[%s3409_s23 + $0xd0] sm:$0xff] }
 0x185   : > { %v1249_v54 = vmul.f32 %v1217_v8, %v3645_v57  ;;  %v1220_v24 = vmul.f32 %v1188_v38, %v3654_v42  ;;  %v1178_v60 = vmul.f32 0.5, %v3574_v31  ;;  %v1186_v1 = vmul.f32 0.044715, %v3667_v11 }
 0x186   : > { %2980 = vtanh.f32 %v1312_v55  ;;  %v1310_v0 = vmul.f32 0.7978846, %v1278_v7  ;;  %v1283_v52 = vadd.f32 %v1251_v50, %v3635_v35  ;;  %v1399_v17 = vadd.f32 1.0, %v2965_v41  ;;  %v389_v55 = vld [vmem:[%s3409_s23 + $0xd8] sm:$0xff] }
 0x187   : > { %v2971_v20 = vpop.eup %2970  ;;  %v1281_v3 = vadd.f32 %v1249_v54, %v3645_v57  ;;  %v1252_v13 = vmul.f32 %v1220_v24, %v3654_v42  ;;  %v1218_v43 = vmul.f32 %v1186_v1, %v3667_v11  ;;  %v1400_v39 = vadd.f32 1.0, %v2967_v28 }
 0x188   : > { %2982 = vtanh.f32 %v1310_v0  ;;  %v1401_v31 = vadd.f32 1.0, %v2969_v61  ;;  %v1315_v10 = vmul.f32 0.7978846, %v1283_v52  ;;  %v1431_v7 = vmul.f32 %v1399_v17, %v3620_v2  ;;  %v390_v61 = vld [vmem:[%s3409_s23 + $0xe0] sm:$0xff]  ;;  %v391_v52 = vld [vmem:[%s3409_s23 + $0xe8] sm:$0xff] }
 0x189   : > { %v1313_v8 = vmul.f32 0.7978846, %v1281_v3  ;;  %v1284_v38 = vadd.f32 %v1252_v13, %v3654_v42  ;;  %v1250_v54 = vmul.f32 %v1218_v43, %v3667_v11  ;;  %v1432_v41 = vmul.f32 %v1400_v39, %v3623_v4 }
 0x18a   : > { %v2973_v50 = vpop.eup %2972  ;;  %v1402_v24 = vadd.f32 1.0, %v2971_v20  ;;  %v1433_v0 = vmul.f32 %v1401_v31, %v3638_v47  ;;  %2984 = vtanh.f32 %v1315_v10  ;;  %v3687_v28 = vadd.f32 %v1431_v7, %v388_v9  ;;  %v393_v7 = vld [vmem:[%s3409_s23 + $0xf8] sm:$0xff] }
 0x18b   : > { %v1316_v1 = vmul.f32 0.7978846, %v1284_v38  ;;  %2986 = vtanh.f32 %v1313_v8  ;;  %v1282_v3 = vadd.f32 %v1250_v54, %v3667_v11  ;;  %v3692_v13 = vadd.f32 %v1432_v41, %v389_v55  ;;  %v392_v55 = vld [vmem:[%s3409_s23 + $0xf0] sm:$0xff] }
 0x18c   : > { %v1434_v2 = vmul.f32 %v1402_v24, %v1178_v60  ;;  %v1179_v4 = vmul.f32 0.5, %v3585_v56  ;;  %v1403_v20 = vadd.f32 1.0, %v2973_v50  ;;  %v3697_v9 = vadd.f32 %v1433_v0, %v390_v61 }
 0x18d   : > { %2988 = vtanh.f32 %v1316_v1  ;;  %v1314_v47 = vmul.f32 0.7978846, %v1282_v3  ;;  %v1482_v43 = vpack.c.bf16 %v3692_v13, %v3687_v28  ;;  %v1180_v10 = vmul.f32 0.5, %v3597_v27 }
 0x18e   : > { %v2975_v17 = vpop.eup %2974  ;;  %v3699_v39 = vadd.f32 %v1434_v2, %v391_v52  ;;  %v1435_v60 = vmul.f32 %v1403_v20, %v1179_v4  ;;  %v1151_v41 = vmul.f32 0.5, %v3600_v23  ;;  %v1149_v52 = vmul.f32 0.5, %v3610_v32  ;;  %v364_v20 = vld [vmem:[%s3409_s23 + $0x10] sm:$0xff] }
 0x18f   : > { %v2977_v31 = vpop.eup %2976  ;;  %v1404_v8 = vadd.f32 1.0, %v2975_v17  ;;  %2990 = vtanh.f32 %v1314_v47  ;;  %v1152_v3 = vmul.f32 0.5, %v3616_v33  ;;  %v365_v17 = vld [vmem:[%s3409_s23 + $0x18] sm:$0xff] }
 0x190   : > { %v1375_v38 = vadd.f32 1.0, %v2977_v31  ;;  %v3707_v27 = vadd.f32 %v1435_v60, %v392_v55  ;;  %v1150_v31 = vmul.f32 0.5, %v3630_v40  ;;  %v362_v60 = vld [vmem:[%s3409_s23] sm:$0xff]  ;;  %v363_v55 = vld [vmem:[%s3409_s23 + $0x8] sm:$0xff]  ;;  %v1156_v40 = vmul.f32 0.5, %v3654_v42 }
 0x191   : > { %v2979_v50 = vpop.eup %2978  ;;  %v1436_v54 = vmul.f32 %v1404_v8, %v1180_v10  ;;  %v4272_v19 = vpack.c.bf16 %v3699_v39, %v3697_v9 }
 0x192   : > { %v1373_v24 = vadd.f32 1.0, %v2979_v50  ;;  %v1407_v61 = vmul.f32 %v1375_v38, %v1151_v41 }
 0x193   : > { %v2981_v0 = vpop.eup %2980  ;;  %v3709_v1 = vadd.f32 %v1436_v54, %v393_v7  ;;  %v1155_v54 = vmul.f32 0.5, %v3635_v35  ;;  %v2921_v35 = vld [vmem:[%s4267_s5 + $0x30] sm:$0xff]  }
 0x194   : > { %v1376_v2 = vadd.f32 1.0, %v2981_v0  ;;  %v1405_v8 = vmul.f32 %v1373_v24, %v1149_v52  ;;  %v1439_v38 = vadd.f32 %v1407_v61, %v364_v20  ;;  %v1153_v61 = vmul.f32 0.5, %v3645_v57  ;;  %v369_v20 = vld [vmem:[%s3409_s23 + $0x38] sm:$0xff] }
 0x195   : > { %v2983_v4 = vpop.eup %2982  ;;  %v1484_v23 = vpack.c.bf16 %v3709_v1, %v3707_v27 }
 0x196   : > { %v1408_v47 = vmul.f32 %v1376_v2, %v1152_v3  ;;  %v1374_v10 = vadd.f32 1.0, %v2983_v4  ;;  %v1437_v56 = vadd.f32 %v1405_v8, %v362_v60  ;;  %v368_v4 = vld [vmem:[%s3409_s23 + $0x30] sm:$0xff]  ;;  %v366_v8 = vld [vmem:[%s3409_s23 + $0x20] sm:$0xff]  ;;  %v367_v60 = vld [vmem:[%s3409_s23 + $0x28] sm:$0xff]  ;;  %s4211_s23 = scalar_lea.hbm %s4269_s7, %s2497_s17 }
 0x197   : > { %v2985_v7 = vpop.eup %2984 }
 0x198   : > { %v1440_v32 = vadd.f32 %v1408_v47, %v365_v17  ;;  %v1406_v33 = vmul.f32 %v1374_v10, %v1150_v31  ;;  %v2987_v50 = vpop.eup %2986  ;;  %v1379_v41 = vadd.f32 1.0, %v2985_v7  ;;  %v1154_v31 = vmul.f32 0.5, %v3667_v11 }
 0x199   : > { %v1377_v3 = vadd.f32 1.0, %v2987_v50 }
 0x19a   : > { %v2989_v0 = vpop.eup %2988  ;;  %v1438_v27 = vadd.f32 %v1406_v33, %v363_v55  ;;  %v1470_v1 = vpack.c.bf16 %v1440_v32, %v1439_v38  ;;  %v1411_v52 = vmul.f32 %v1379_v41, %v1155_v54  ;;  %v2922_v38 = vld [vmem:[%s4267_s5 + $0x28] sm:$0xff]  }
 0x19b   : > { %v1380_v24 = vadd.f32 1.0, %v2989_v0  ;;  %v1409_v42 = vmul.f32 %v1377_v3, %v1153_v61 }
 0x19c   : > { %v1469_v2 = vpack.c.bf16 %v1438_v27, %v1437_v56  ;;  %v2991_v17 = vpop.eup %2990  ;;  %v1443_v57 = vadd.f32 %v1411_v52, %v368_v4 }
 0x19d   : > { %v1412_v47 = vmul.f32 %v1380_v24, %v1156_v40  ;;  %v1378_v10 = vadd.f32 1.0, %v2991_v17  ;;  %v1441_v11 = vadd.f32 %v1409_v42, %v366_v8 }
 0x19e   : > { %2710 = vmatprep.mubr.msk.bf16.mxu1 %vm778_vm0, %v1469_v2 }
 0x19f   : > { %2711 = vmatmul.mubr.msk.bf16.vlgmr.msra.gmra.mxu1 %vm778_vm0, %v1470_v1  ;;  %v1444_v56 = vadd.f32 %v1412_v47, %v369_v20  ;;  %v1410_v55 = vmul.f32 %v1378_v10, %v1154_v31 }
 0x1a0   : > { %2743 = vmatpush3.bf16.msra.mxu1 %v3509_v12 }
 0x1a1   : > { %v1472_v7 = vpack.c.bf16 %v1444_v56, %v1443_v57  ;;  %2744 = vmatprep.subr.bf16.mxu1 %v2921_v35  ;;  %v1442_v32 = vadd.f32 %v1410_v55, %v367_v60 }
 0x1a3   : > { %v1471_v33 = vpack.c.bf16 %v1442_v32, %v1441_v11 }
 0x1a4   : > { %2745 = vmatpush3.bf16.msra.mxu1 %v2921_v35 }
 0x1a5   : > { %2746 = vmatprep.subr.bf16.mxu1 %v2922_v38  ;;  %2714 = vmatprep.mubr.msk.bf16.mxu1 %vm778_vm0, %v1471_v33 }
 0x1a7   : > { %2715 = vmatmul.mubr.msk.bf16.gmra.mxu1 %vm778_vm0, %v1472_v7 }
 0x1a8   : > { %2718 = vmatprep.mubr.msk.bf16.mxu1 %vm778_vm0, %v1473_v51  ;;  %2747 = vmatpush3.bf16.msra.mxu1 %v2922_v38  ;;  %v2924_v51 = vld [vmem:[%s4267_s5 + $0x18] sm:$0xff]  }
 0x1a9   : > { %2748 = vmatprep.subr.bf16.mxu1 %v2923_v21 }
 0x1ac   : > { %2749 = vmatpush3.bf16.msra.mxu1 %v2923_v21 }
 0x1ad   : > { %2750 = vmatprep.subr.bf16.mxu1 %v2924_v51 }
 0x1af   : > { %2719 = vmatmul.mubr.msk.bf16.gmra.mxu1 %vm778_vm0, %v1474_v63  ;;  %v2927_v63 = vld [vmem:[%s4267_s5] sm:$0xff]  }
 0x1b0   : > { %2722 = vmatprep.mubr.msk.bf16.mxu1 %vm778_vm0, %v1475_v34  ;;  %2751 = vmatpush3.bf16.msra.mxu1 %v2924_v51 }
 0x1b1   : > { %2752 = vmatprep.subr.bf16.mxu1 %v2925_v53 }
 0x1b4   : > { %2753 = vmatpush3.bf16.msra.mxu1 %v2925_v53 }
 0x1b5   : > { %2754 = vmatprep.subr.bf16.mxu1 %v2926_v59 }
 0x1b7   : > { %2723 = vmatmul.mubr.msk.bf16.gmra.mxu1 %vm778_vm0, %v1476_v36 }
 0x1b8   : > { %2726 = vmatprep.mubr.msk.bf16.mxu1 %vm778_vm0, %v1477_v48  ;;  %2755 = vmatpush3.bf16.msra.mxu1 %v2926_v59 }
 0x1b9   : > { %2756 = vmatprep.subr.bf16.mxu1 %v2927_v63 }
 0x1bc   : > { %2757 = vmatpush3.bf16.msra.mxu1 %v2927_v63 }
 0x1bf   : > { %2727 = vmatmul.mubr.msk.bf16.gmra.mxu1 %vm778_vm0, %v1478_v58 }
 0x1c0   : > { %2730 = vmatprep.mubr.msk.bf16.mxu1 %vm778_vm0, %v1479_v37 }
 0x1c7   : > { %2731 = vmatmul.mubr.msk.bf16.gmra.mxu1 %vm778_vm0, %v1480_v46 }
 0x1c8   : > { %2734 = vmatprep.mubr.msk.bf16.mxu1 %vm778_vm0, %v1481_v62 }
 0x1cf   : > { %2735 = vmatmul.mubr.msk.bf16.gmra.mxu1 %vm778_vm0, %v1482_v43 }
 0x1d0   : > { %2738 = vmatprep.mubr.msk.bf16.mxu1 %vm778_vm0, %v4272_v19 }
 0x1d7   : > { %2739 = vmatmul.mubr.msk.bf16.gmra.mxu1 %vm778_vm0, %v1484_v23 }
 0x25f   : > { %v2712_v45 = vpop.f32.mrf.mxu1 }
 0x260   : > { %v3805_v34 = vadd.f32 %v2712_v45, %v3802_v44 }
 0x261   : > { %v1590_v15 = vpop.f32.mrf.mxu1 }
 0x262   : > { %v1751_v26 = vmul.f32 0.044715, %v3805_v34  ;;  %v3809_v36 = vadd.f32 %v3802_v44, %v1590_v15 }
 0x263   : > { %v2713_v12 = vpop.f32.mrf.mxu1 }
 0x264   : > { %v1783_v16 = vmul.f32 %v1751_v26, %v3805_v34  ;;  %v1749_v18 = vmul.f32 0.044715, %v3809_v36  ;;  %v3814_v48 = vadd.f32 %v2713_v12, %v3802_v44 }
 0x265   : > { %v1593_v30 = vpop.f32.mrf.mxu1 }
 0x266   : > { %v1815_v29 = vmul.f32 %v1783_v16, %v3805_v34  ;;  %v1781_v58 = vmul.f32 %v1749_v18, %v3809_v36  ;;  %v1752_v49 = vmul.f32 0.044715, %v3814_v48  ;;  %v3820_v5 = vadd.f32 %v3802_v44, %v1593_v30 }
 0x267   : > { %v2716_v37 = vpop.f32.mrf.mxu1 }
 0x268   : > { %v1847_v6 = vadd.f32 %v1815_v29, %v3805_v34  ;;  %v1813_v22 = vmul.f32 %v1781_v58, %v3809_v36  ;;  %v1784_v46 = vmul.f32 %v1752_v49, %v3814_v48  ;;  %v3826_v14 = vadd.f32 %v2716_v37, %v3802_v44 }
 0x269   : > { %v1750_v25 = vmul.f32 0.044715, %v3820_v5  ;;  %v1606_v62 = vpop.f32.mrf.mxu1  ;;  %v1719_v37 = vmul.f32 0.5, %v3805_v34  ;;  %v1718_v34 = vmul.f32 0.5, %v3820_v5 }
 0x26a   : > { %v1879_v28 = vmul.f32 0.7978846, %v1847_v6  ;;  %v1816_v13 = vmul.f32 %v1784_v46, %v3814_v48  ;;  %v1755_v43 = vmul.f32 0.044715, %v3826_v14  ;;  %v3832_v9 = vadd.f32 %v3802_v44, %v1606_v62 }
 0x26b   : > { %v1782_v39 = vmul.f32 %v1750_v25, %v3820_v5  ;;  %v2717_v23 = vpop.f32.mrf.mxu1  ;;  %v1845_v50 = vadd.f32 %v1813_v22, %v3809_v36  ;;  %v1717_v22 = vmul.f32 0.5, %v3809_v36  ;;  %v1720_v62 = vmul.f32 0.5, %v3814_v48 }
 0x26c   : > { %v1848_v54 = vadd.f32 %v1816_v13, %v3814_v48  ;;  %v1787_v41 = vmul.f32 %v1755_v43, %v3826_v14  ;;  %v1753_v0 = vmul.f32 0.044715, %v3832_v9  ;;  %2992 = vtanh.f32 %v1879_v28 }
 0x26d   : > { %v1814_v27 = vmul.f32 %v1782_v39, %v3820_v5  ;;  %v3841_v1 = vadd.f32 %v2717_v23, %v3802_v44  ;;  %v1609_v3 = vpop.f32.mrf.mxu1  ;;  %v1877_v40 = vmul.f32 0.7978846, %v1845_v50  ;;  %v3896_v48 = vmul.f32 0.5, %v3832_v9 }
 0x26e   : > { %v1880_v24 = vmul.f32 0.7978846, %v1848_v54  ;;  %v1819_v52 = vmul.f32 %v1787_v41, %v3826_v14  ;;  %v1785_v61 = vmul.f32 %v1753_v0, %v3832_v9  ;;  %v3846_v2 = vadd.f32 %v3802_v44, %v1609_v3 }
 0x26f   : > { %v1756_v4 = vmul.f32 0.044715, %v3841_v1  ;;  %v2720_v20 = vpop.f32.mrf.mxu1  ;;  %v1846_v17 = vadd.f32 %v1814_v27, %v3820_v5  ;;  %2994 = vtanh.f32 %v1877_v40  ;;  %v3899_v41 = vmul.f32 0.5, %v3826_v14 }
 0x270   : > { %2996 = vtanh.f32 %v1880_v24  ;;  %v1817_v47 = vmul.f32 %v1785_v61, %v3832_v9  ;;  %v1754_v35 = vmul.f32 0.044715, %v3846_v2  ;;  %v3853_v31 = vadd.f32 %v2720_v20, %v3802_v44 }
 0x271   : > { %v1788_v10 = vmul.f32 %v1756_v4, %v3841_v1  ;;  %v1622_v42 = vpop.f32.mrf.mxu1  ;;  %v1878_v8 = vmul.f32 0.7978846, %v1846_v17  ;;  %v1851_v60 = vadd.f32 %v1819_v52, %v3826_v14  ;;  %v3907_v24 = vmul.f32 0.5, %v3841_v1 }
 0x272   : > { %v1786_v57 = vmul.f32 %v1754_v35, %v3846_v2  ;;  %v1759_v56 = vmul.f32 0.044715, %v3853_v31  ;;  %v3860_v55 = vadd.f32 %v3802_v44, %v1622_v42  ;;  %v1849_v7 = vadd.f32 %v1817_v47, %v3832_v9 }
 0x273   : > { %v1820_v38 = vmul.f32 %v1788_v10, %v3841_v1  ;;  %v2721_v11 = vpop.f32.mrf.mxu1  ;;  %2998 = vtanh.f32 %v1878_v8  ;;  %v1883_v32 = vmul.f32 0.7978846, %v1851_v60  ;;  %v3914_v4 = vmul.f32 0.5, %v3846_v2 }
 0x274   : > { %v1818_v33 = vmul.f32 %v1786_v57, %v3846_v2  ;;  %v1791_v19 = vmul.f32 %v1759_v56, %v3853_v31  ;;  %v1757_v21 = vmul.f32 0.044715, %v3860_v55  ;;  %v3868_v51 = vadd.f32 %v2721_v11, %v3802_v44 }
 0x275   : > { %v1625_v53 = vpop.f32.mrf.mxu1  ;;  %v1881_v59 = vmul.f32 0.7978846, %v1849_v7  ;;  %v1852_v63 = vadd.f32 %v1820_v38, %v3841_v1  ;;  %3000 = vtanh.f32 %v1883_v32  ;;  %v3920_v8 = vmul.f32 0.5, %v3853_v31 }
 0x276   : > { %v1789_v45 = vmul.f32 %v1757_v21, %v3860_v55  ;;  %v1760_v15 = vmul.f32 0.044715, %v3868_v51  ;;  %v3874_v26 = vadd.f32 %v3802_v44, %v1625_v53  ;;  %v1850_v16 = vadd.f32 %v1818_v33, %v3846_v2 }
 0x277   : > { %v2724_v12 = vpop.f32.mrf.mxu1  ;;  %3002 = vtanh.f32 %v1881_v59  ;;  %v1884_v18 = vmul.f32 0.7978846, %v1852_v63  ;;  %v1823_v30 = vmul.f32 %v1791_v19, %v3853_v31  ;;  %v3928_v19 = vmul.f32 0.5, %v3860_v55 }
 0x278   : > { %v1821_v29 = vmul.f32 %v1789_v45, %v3860_v55  ;;  %v1792_v58 = vmul.f32 %v1760_v15, %v3868_v51  ;;  %v1758_v49 = vmul.f32 0.044715, %v3874_v26  ;;  %v1882_v46 = vmul.f32 0.7978846, %v1850_v16 }
 0x279   : > { %v1638_v6 = vpop.f32.mrf.mxu1  ;;  %3004 = vtanh.f32 %v1884_v18  ;;  %v2993_v25 = vpop.eup %2992  ;;  %v3886_v13 = vadd.f32 %v2724_v12, %v3802_v44  ;;  %v1855_v0 = vadd.f32 %v1823_v30, %v3853_v31 }
 0x27a   : > { %v1790_v28 = vmul.f32 %v1758_v49, %v3874_v26  ;;  %v3889_v43 = vadd.f32 %v3802_v44, %v1638_v6  ;;  %v1824_v39 = vmul.f32 %v1792_v58, %v3868_v51  ;;  %3006 = vtanh.f32 %v1882_v46 }
 0x27b   : > { %v2725_v23 = vpop.f32.mrf.mxu1  ;;  %v1853_v36 = vadd.f32 %v1821_v29, %v3860_v55  ;;  %v1763_v61 = vmul.f32 0.044715, %v3886_v13  ;;  %v1943_v42 = vadd.f32 1.0, %v2993_v25  ;;  %v1887_v60 = vmul.f32 0.7978846, %v1855_v0 }
 0x27c   : > { %v2995_v50 = vpop.eup %2994  ;;  %v1822_v54 = vmul.f32 %v1790_v28, %v3874_v26  ;;  %v1761_v3 = vmul.f32 0.044715, %v3889_v43  ;;  %v3904_v40 = vadd.f32 %v2725_v23, %v3802_v44  ;;  %v1856_v35 = vadd.f32 %v1824_v39, %v3868_v51 }
 0x27d   : > { %v2997_v27 = vpop.eup %2996  ;;  %v1641_v5 = vpop.f32.mrf.mxu1  ;;  %v1885_v52 = vmul.f32 0.7978846, %v1853_v36  ;;  %v1941_v14 = vadd.f32 1.0, %v2995_v50  ;;  %v1795_v15 = vmul.f32 %v1763_v61, %v3886_v13  ;;  %v1975_v18 = vmul.f32 %v1943_v42, %v1719_v37 }
 0x27e   : > { %v3911_v9 = vadd.f32 %v3802_v44, %v1641_v5  ;;  %v1944_v17 = vadd.f32 1.0, %v2997_v27  ;;  %v1854_v47 = vadd.f32 %v1822_v54, %v3874_v26  ;;  %v1793_v57 = vmul.f32 %v1761_v3, %v3889_v43 }
 0x27f   : > { %v2728_v20 = vpop.f32.mrf.mxu1  ;;  %3008 = vtanh.f32 %v1885_v52  ;;  %v1764_v2 = vmul.f32 0.044715, %v3904_v40  ;;  %v1973_v32 = vmul.f32 %v1941_v14, %v1717_v22  ;;  %v1888_v63 = vmul.f32 0.7978846, %v1856_v35 }
 0x280   : > { %v2999_v10 = vpop.eup %2998  ;;  %v1762_v1 = vmul.f32 0.044715, %v3911_v9  ;;  %v1886_v38 = vmul.f32 0.7978846, %v1854_v47  ;;  %v3925_v11 = vadd.f32 %v2728_v20, %v3802_v44  ;;  %v1976_v33 = vmul.f32 %v1944_v17, %v1720_v62 }
 0x281   : > { %v1654_v56 = vpop.f32.mrf.mxu1  ;;  %v1942_v7 = vadd.f32 1.0, %v2999_v10  ;;  %v1825_v55 = vmul.f32 %v1793_v57, %v3889_v43  ;;  %v1796_v30 = vmul.f32 %v1764_v2, %v3904_v40  ;;  %v3951_v54 = vmul.f32 0.5, %v3868_v51 }
 0x282   : > { %v3001_v21 = vpop.eup %3000  ;;  %v1794_v31 = vmul.f32 %v1762_v1, %v3911_v9  ;;  %3010 = vtanh.f32 %v1886_v38  ;;  %v3933_v12 = vadd.f32 %v3802_v44, %v1654_v56  ;;  %v1767_v6 = vmul.f32 0.044715, %v3925_v11 }
 0x283   : > { %v2729_v53 = vpop.f32.mrf.mxu1  ;;  %v1974_v59 = vmul.f32 %v1942_v7, %v1718_v34  ;;  %3012 = vtanh.f32 %v1887_v60  ;;  %v2006_v46 = vpack.c.bf16 %v1976_v33, %v1975_v18  ;;  %v1947_v25 = vadd.f32 1.0, %v3001_v21 }
 0x284   : > { %v3003_v45 = vpop.eup %3002  ;;  %v3936_v16 = vadd.f32 %v2729_v53, %v3802_v44  ;;  %v1826_v62 = vmul.f32 %v1794_v31, %v3911_v9  ;;  %3014 = vtanh.f32 %v1888_v63  ;;  %v1765_v34 = vmul.f32 0.044715, %v3933_v12 }
 0x285   : > { %v1657_v29 = vpop.f32.mrf.mxu1  ;;  %v2005_v58 = vpack.c.bf16 %v1974_v59, %v1973_v32  ;;  %v1945_v37 = vadd.f32 1.0, %v3003_v45  ;;  %v1827_v0 = vmul.f32 %v1795_v15, %v3886_v13  ;;  %v1857_v52 = vadd.f32 %v1825_v55, %v3889_v43 }
 0x286   : > { %v3005_v49 = vpop.eup %3004  ;;  %v3942_v22 = vadd.f32 %v3802_v44, %v1657_v29  ;;  %v1768_v36 = vmul.f32 0.044715, %v3936_v16  ;;  %v1828_v61 = vmul.f32 %v1796_v30, %v3904_v40  ;;  %v1799_v14 = vmul.f32 %v1767_v6, %v3925_v11 }
 0x287   : > { %2758 = vmatprep.mubr.bf16.mxu1 %v2005_v58  ;;  %v2732_v28 = vpop.f32.mrf.mxu1  ;;  %v1948_v39 = vadd.f32 1.0, %v3005_v49  ;;  %v3007_v23 = vpop.eup %3006  ;;  %v1979_v20 = vmul.f32 %v1947_v25, %v3899_v41  ;;  %v1977_v51 = vmul.f32 %v1945_v37, %v3896_v48  ;;  %v1858_v10 = vadd.f32 %v1826_v62, %v3911_v9 }
 0x288   : > { %v3948_v50 = vadd.f32 %v2732_v28, %v3802_v44  ;;  %2759 = vmatmul.mubr.bf16.vlgmr.msra.gmra.mxu1 %v2006_v46  ;;  %v1766_v27 = vmul.f32 0.044715, %v3942_v22  ;;  %v1946_v5 = vadd.f32 1.0, %v3007_v23  ;;  %v1889_v1 = vmul.f32 0.7978846, %v1857_v52 }
 0x289   : > { %v1670_v3 = vpop.f32.mrf.mxu1  ;;  %v1980_v17 = vmul.f32 %v1948_v39, %v3907_v24  ;;  %v1797_v60 = vmul.f32 %v1765_v34, %v3933_v12  ;;  %v1800_v57 = vmul.f32 %v1768_v36, %v3936_v16  ;;  %v1890_v48 = vmul.f32 0.7978846, %v1858_v10 }
 0x28a   : > { %v1978_v35 = vmul.f32 %v1946_v5, %v3914_v4  ;;  %v1771_v2 = vmul.f32 0.044715, %v3948_v50  ;;  %v3967_v56 = vadd.f32 %v3802_v44, %v1670_v3  ;;  %v1798_v41 = vmul.f32 %v1766_v27, %v3942_v22 }
 0x28b   : > { %v2733_v47 = vpop.f32.mrf.mxu1  ;;  %3016 = vtanh.f32 %v1889_v1  ;;  %v2008_v32 = vpack.c.bf16 %v1980_v17, %v1979_v20  ;;  %v3977_v21 = vmul.f32 %v1799_v14, %v3925_v11  ;;  %v1726_v53 = vmul.f32 0.5, %v3874_v26 }
 0x28c   : > { %v3009_v42 = vpop.eup %3008  ;;  %v2007_v7 = vpack.c.bf16 %v1978_v35, %v1977_v51  ;;  %v3971_v4 = vadd.f32 %v2733_v47, %v3802_v44  ;;  %v3981_v59 = vmul.f32 0.5, %v3889_v43  ;;  %3018 = vtanh.f32 %v1890_v48 }
 0x28d   : > { %v1673_v24 = vpop.f32.mrf.mxu1  ;;  %v1949_v33 = vadd.f32 1.0, %v3009_v42  ;;  %v1829_v45 = vmul.f32 %v1797_v60, %v3933_v12  ;;  %v1803_v15 = vmul.f32 %v1771_v2, %v3948_v50  ;;  %v1769_v18 = vmul.f32 0.044715, %v3967_v56 }
 0x28e   : > { %v3974_v38 = vadd.f32 %v3802_v44, %v1673_v24  ;;  %2762 = vmatprep.mubr.bf16.mxu1 %v2007_v7  ;;  %v3987_v55 = vmul.f32 0.5, %v3911_v9  ;;  %v3990_v30 = vmul.f32 %v1800_v57, %v3936_v16  ;;  %v1859_v43 = vadd.f32 %v1827_v0, %v3886_v13 }
 0x28f   : > { %v2736_v31 = vpop.f32.mrf.mxu1  ;;  %v3011_v63 = vpop.eup %3010  ;;  %v1860_v58 = vadd.f32 %v1828_v61, %v3904_v40  ;;  %v1830_v6 = vmul.f32 %v1798_v41, %v3942_v22  ;;  %v1772_v46 = vmul.f32 0.044715, %v3971_v4  ;;  %v1981_v62 = vmul.f32 %v1949_v33, %v3928_v19 }
 0x290   : > { %2763 = vmatmul.mubr.bf16.gmra.mxu1 %v2008_v32  ;;  %v1950_v26 = vadd.f32 1.0, %v3011_v63  ;;  %v3013_v49 = vpop.eup %3012  ;;  %v1770_v25 = vmul.f32 0.044715, %v3974_v38  ;;  %v1891_v39 = vmul.f32 0.7978846, %v1859_v43  ;;  %v3999_v36 = vmul.f32 %v1803_v15, %v3948_v50 }
 0x291   : > { %v1686_v29 = vpop.f32.mrf.mxu1  ;;  %v1951_v37 = vadd.f32 1.0, %v3013_v49  ;;  %v1892_v23 = vmul.f32 0.7978846, %v1860_v58  ;;  %v3015_v34 = vpop.eup %3014  ;;  %v1801_v0 = vmul.f32 %v1769_v18, %v3967_v56  ;;  %v4003_v27 = vadd.f32 %v2736_v31, %v3802_v44 }
 0x292   : > { %v1982_v28 = vmul.f32 %v1950_v26, %v1726_v53  ;;  %v4006_v3 = vmul.f32 0.5, %v3886_v13  ;;  %v4009_v5 = vadd.f32 %v3802_v44, %v1686_v29  ;;  %v1952_v61 = vadd.f32 1.0, %v3015_v34 }
 0x293   : > { %v2737_v9 = vpop.f32.mrf.mxu1  ;;  %3020 = vtanh.f32 %v1891_v39  ;;  %v1804_v14 = vmul.f32 %v1772_v46, %v3971_v4  ;;  %v1802_v20 = vmul.f32 %v1770_v25, %v3974_v38  ;;  %v1983_v51 = vmul.f32 %v1951_v37, %v3920_v8 }
 0x294   : > { %v2009_v52 = vpack.c.bf16 %v1982_v28, %v1981_v62  ;;  %v4014_v17 = vadd.f32 %v2737_v9, %v3802_v44  ;;  %v1984_v35 = vmul.f32 %v1952_v61, %v3951_v54  ;;  %3022 = vtanh.f32 %v1892_v23 }
 0x295   : > { %v1689_v19 = vpop.f32.mrf.mxu1  ;;  %v1861_v10 = vadd.f32 %v1829_v45, %v3933_v12  ;;  %v1833_v1 = vmul.f32 %v1801_v0, %v3967_v56  ;;  %v1775_v42 = vmul.f32 0.044715, %v4003_v27  ;;  %v4025_v60 = vmul.f32 0.5, %v3904_v40 }
 0x296   : > { %v4017_v47 = vadd.f32 %v3802_v44, %v1689_v19  ;;  %2766 = vmatprep.mubr.bf16.mxu1 %v2009_v52  ;;  %v4028_v57 = vmul.f32 0.5, %v3933_v12  ;;  %v1773_v2 = vmul.f32 0.044715, %v4009_v5  ;;  %v2010_v41 = vpack.c.bf16 %v1984_v35, %v1983_v51 }
 0x297   : > { %v2740_v13 = vpop.f32.mrf.mxu1  ;;  %v1862_v8 = vadd.f32 %v1830_v6, %v3942_v22  ;;  %v1893_v54 = vmul.f32 0.7978846, %v1861_v10  ;;  %v1836_v48 = vmul.f32 %v1804_v14, %v3971_v4  ;;  %v1776_v32 = vmul.f32 0.044715, %v4014_v17 }
 0x298   : > { %v3017_v7 = vpop.eup %3016  ;;  %v1774_v33 = vmul.f32 0.044715, %v4017_v47  ;;  %v1834_v12 = vmul.f32 %v1802_v20, %v3974_v38  ;;  %2767 = vmatmul.mubr.bf16.gmra.mxu1 %v2010_v41  ;;  %v1807_v15 = vmul.f32 %v1775_v42, %v4003_v27  ;;  %v4041_v18 = vadd.f32 %v2740_v13, %v3802_v44 }
 0x299   : > { %v1702_v24 = vpop.f32.mrf.mxu1  ;;  %v1953_v53 = vadd.f32 1.0, %v3017_v7  ;;  %v1894_v63 = vmul.f32 0.7978846, %v1862_v8  ;;  %3024 = vtanh.f32 %v1893_v54  ;;  %v3019_v45 = vpop.eup %3018  ;;  %v1805_v43 = vmul.f32 %v1773_v2, %v4009_v5 }
 0x29a   : > { %v4036_v40 = vadd.f32 %v3802_v44, %v1702_v24  ;;  %v1954_v49 = vadd.f32 1.0, %v3019_v45  ;;  %v1863_v6 = vadd.f32 %v3977_v21, %v3925_v11  ;;  %v1808_v46 = vmul.f32 %v1776_v32, %v4014_v17 }
 0x29b   : > { %v2741_v31 = vpop.f32.mrf.mxu1  ;;  %3026 = vtanh.f32 %v1894_v63  ;;  %v1806_v25 = vmul.f32 %v1774_v33, %v4017_v47  ;;  %v1985_v28 = vmul.f32 %v1953_v53, %v3981_v59  ;;  %v1864_v39 = vadd.f32 %v3990_v30, %v3936_v16 }
 0x29c   : > { %v1777_v29 = vmul.f32 0.044715, %v4036_v40  ;;  %v4045_v26 = vadd.f32 %v2741_v31, %v3802_v44  ;;  %v1986_v37 = vmul.f32 %v1954_v49, %v3987_v55  ;;  %v1895_v23 = vmul.f32 0.7978846, %v1863_v6 }
 0x29d   : > { %v1705_v58 = vpop.f32.mrf.mxu1  ;;  %v1839_v34 = vmul.f32 %v1807_v15, %v4003_v27  ;;  %v1779_v21 = vmul.f32 0.044715, %v4041_v18  ;;  %v1896_v61 = vmul.f32 0.7978846, %v1864_v39  ;;  %v1837_v55 = vmul.f32 %v1805_v43, %v4009_v5 }
 0x29e   : > { %v1780_v62 = vmul.f32 0.044715, %v4045_v26  ;;  %v4054_v9 = vadd.f32 %v3802_v44, %v1705_v58  ;;  %v1809_v0 = vmul.f32 %v1777_v29, %v4036_v40  ;;  %v2011_v52 = vpack.c.bf16 %v1986_v37, %v1985_v28 }
 0x29f   : > { %3028 = vtanh.f32 %v1895_v23  ;;  %v1865_v44 = vadd.f32 %v1833_v1, %v3967_v56  ;;  %v1840_v14 = vmul.f32 %v1808_v46, %v4014_v17  ;;  %v1866_v20 = vadd.f32 %v1834_v12, %v3974_v38 }
 0x2a0   : > { %v1778_v19 = vmul.f32 0.044715, %v4054_v9  ;;  %v3021_v59 = vpop.eup %3020  ;;  %v1812_v30 = vmul.f32 %v1780_v62, %v4045_v26  ;;  %v1838_v13 = vmul.f32 %v1806_v25, %v4017_v47  ;;  %2770 = vmatprep.mubr.bf16.mxu1 %v2011_v52  ;;  %3030 = vtanh.f32 %v1896_v61 }
 0x2a1   : > { %v1955_v51 = vadd.f32 1.0, %v3021_v59  ;;  %v1897_v35 = vmul.f32 0.7978846, %v1865_v44  ;;  %v3023_v10 = vpop.eup %3022  ;;  %v1898_v2 = vmul.f32 0.7978846, %v1866_v20  ;;  %v1867_v1 = vadd.f32 %v3999_v36, %v3948_v50 }
 0x2a2   : > { %v1810_v42 = vmul.f32 %v1778_v19, %v4054_v9  ;;  %v1868_v41 = vadd.f32 %v1836_v48, %v3971_v4  ;;  %v1811_v24 = vmul.f32 %v1779_v21, %v4041_v18  ;;  %v1841_v8 = vmul.f32 %v1809_v0, %v4036_v40 }
 0x2a3   : > { %v1956_v54 = vadd.f32 1.0, %v3023_v10  ;;  %3032 = vtanh.f32 %v1897_v35  ;;  %v1844_v7 = vmul.f32 %v1812_v30, %v4045_v26  ;;  %v1899_v32 = vmul.f32 0.7978846, %v1867_v1 }
 0x2a4   : > { %3034 = vtanh.f32 %v1898_v2  ;;  %v1900_v33 = vmul.f32 0.7978846, %v1868_v41  ;;  %v1987_v12 = vmul.f32 %v1955_v51, %v4006_v3  ;;  %v1869_v53 = vadd.f32 %v1837_v55, %v4009_v5 }
 0x2a5   : > { %v1988_v31 = vmul.f32 %v1956_v54, %v4025_v60  ;;  %v1870_v36 = vadd.f32 %v1838_v13, %v4017_v47  ;;  %v1842_v63 = vmul.f32 %v1810_v42, %v4054_v9  ;;  %3036 = vtanh.f32 %v1899_v32 }
 0x2a6   : > { %v3025_v48 = vpop.eup %3024  ;;  %v1871_v45 = vadd.f32 %v1839_v34, %v4003_v27  ;;  %v1872_v15 = vadd.f32 %v1840_v14, %v4014_v17  ;;  %3038 = vtanh.f32 %v1900_v33  ;;  %v1901_v58 = vmul.f32 0.7978846, %v1869_v53 }
 0x2a7   : > { %v2012_v29 = vpack.c.bf16 %v1988_v31, %v1987_v12  ;;  %v1957_v43 = vadd.f32 1.0, %v3025_v48  ;;  %v1902_v3 = vmul.f32 0.7978846, %v1870_v36  ;;  %v1873_v46 = vadd.f32 %v1841_v8, %v4036_v40 }
 0x2a8   : > { %v3027_v49 = vpop.eup %3026  ;;  %v1903_v6 = vmul.f32 0.7978846, %v1871_v45  ;;  %v1904_v60 = vmul.f32 0.7978846, %v1872_v15  ;;  %v1843_v25 = vmul.f32 %v1811_v24, %v4041_v18  ;;  %v1734_v62 = vmul.f32 0.5, %v3942_v22 }
 0x2a9   : > { %2771 = vmatmul.mubr.bf16.gmra.mxu1 %v2012_v29  ;;  %v1958_v28 = vadd.f32 1.0, %v3027_v49  ;;  %3040 = vtanh.f32 %v1901_v58  ;;  %v1874_v37 = vadd.f32 %v1842_v63, %v4054_v9  ;;  %v1905_v39 = vmul.f32 0.7978846, %v1873_v46 }
 0x2aa   : > { %3042 = vtanh.f32 %v1902_v3  ;;  %v1989_v23 = vmul.f32 %v1957_v43, %v4028_v57  ;;  %v1876_v19 = vadd.f32 %v1844_v7, %v4045_v26  ;;  %v1875_v22 = vadd.f32 %v1843_v25, %v4041_v18 }
 0x2ab   : > { %v1990_v34 = vmul.f32 %v1958_v28, %v1734_v62  ;;  %3044 = vtanh.f32 %v1903_v6  ;;  %v1906_v0 = vmul.f32 0.7978846, %v1874_v37  ;;  %v1735_v59 = vmul.f32 0.5, %v3925_v11 }
 0x2ac   : > { %v3029_v21 = vpop.eup %3028  ;;  %3046 = vtanh.f32 %v1904_v60  ;;  %v1736_v55 = vmul.f32 0.5, %v3936_v16  ;;  %v1908_v14 = vmul.f32 0.7978846, %v1876_v19  ;;  %v1907_v10 = vmul.f32 0.7978846, %v1875_v22 }
 0x2ad   : > { %v2013_v52 = vpack.c.bf16 %v1990_v34, %v1989_v23  ;;  %v1959_v61 = vadd.f32 1.0, %v3029_v21  ;;  %3048 = vtanh.f32 %v1905_v39  ;;  %v3031_v44 = vpop.eup %3030  ;;  %v1737_v42 = vmul.f32 0.5, %v3967_v56 }
 0x2ae   : > { %3050 = vtanh.f32 %v1906_v0  ;;  %v1960_v57 = vadd.f32 1.0, %v3031_v44  ;;  %v1738_v2 = vmul.f32 0.5, %v3974_v38  ;;  %v1740_v16 = vmul.f32 0.5, %v3971_v4 }
 0x2af   : > { %2774 = vmatprep.mubr.bf16.mxu1 %v2013_v52  ;;  %v1991_v13 = vmul.f32 %v1959_v61, %v1735_v59  ;;  %3052 = vtanh.f32 %v1908_v14  ;;  %v1739_v56 = vmul.f32 0.5, %v3948_v50  ;;  %v1741_v48 = vmul.f32 0.5, %v4009_v5  ;;  %v4111_v59 = vld [vmem:[%s4268_s6] ss:$0 sm:$0xff] }
 0x2b0   : > { %v3033_v30 = vpop.eup %3032  ;;  %v1992_v51 = vmul.f32 %v1960_v57, %v1736_v55  ;;  %3054 = vtanh.f32 %v1907_v10  ;;  %v1742_v63 = vmul.f32 0.5, %v4017_v47  ;;  %v1746_v50 = vmul.f32 0.5, %v4054_v9 }
 0x2b1   : > { %v3035_v20 = vpop.eup %3034  ;;  %v1961_v35 = vadd.f32 1.0, %v3033_v30  ;;  %v1744_v62 = vmul.f32 0.5, %v4014_v17  ;;  %v1745_v47 = vmul.f32 0.5, %v4036_v40  ;;  %v1743_v37 = vmul.f32 0.5, %v4003_v27 }
 0x2b2   : > { %v1962_v1 = vadd.f32 1.0, %v3035_v20  ;;  %v3037_v41 = vpop.eup %3036  ;;  %v2014_v24 = vpack.c.bf16 %v1992_v51, %v1991_v13  ;;  %v1748_v17 = vmul.f32 0.5, %v4045_v26  ;;  %v1747_v40 = vmul.f32 0.5, %v4041_v18 }
 0x2b3   : > { %v3039_v8 = vpop.eup %3038  ;;  %v1993_v11 = vmul.f32 %v1961_v35, %v1737_v42  ;;  %v1963_v7 = vadd.f32 1.0, %v3037_v41 }
 0x2b4   : > { %v1994_v54 = vmul.f32 %v1962_v1, %v1738_v2  ;;  %2775 = vmatmul.mubr.bf16.gmra.mxu1 %v2014_v24  ;;  %v1964_v32 = vadd.f32 1.0, %v3039_v8 }
 0x2b5   : > { %v1995_v29 = vmul.f32 %v1963_v7, %v1739_v56 }
 0x2b6   : > { %v3041_v33 = vpop.eup %3040  ;;  %v2015_v12 = vpack.c.bf16 %v1994_v54, %v1993_v11  ;;  %v1996_v53 = vmul.f32 %v1964_v32, %v1740_v16 }
 0x2b7   : > { %v3043_v31 = vpop.eup %3042  ;;  %v1965_v38 = vadd.f32 1.0, %v3041_v33 }
 0x2b8   : > { %v3045_v36 = vpop.eup %3044  ;;  %2778 = vmatprep.mubr.bf16.mxu1 %v2015_v12  ;;  %v1966_v45 = vadd.f32 1.0, %v3043_v31  ;;  %v2016_v3 = vpack.c.bf16 %v1996_v53, %v1995_v29 }
 0x2b9   : > { %v3047_v15 = vpop.eup %3046  ;;  %v1997_v43 = vmul.f32 %v1965_v38, %v1741_v48  ;;  %v1967_v5 = vadd.f32 1.0, %v3045_v36 }
 0x2ba   : > { %v3049_v4 = vpop.eup %3048  ;;  %v1998_v58 = vmul.f32 %v1966_v45, %v1742_v63  ;;  %v1968_v6 = vadd.f32 1.0, %v3047_v15 }
 0x2bb   : > { %v3051_v49 = vpop.eup %3050  ;;  %v1969_v46 = vadd.f32 1.0, %v3049_v4  ;;  %v1999_v21 = vmul.f32 %v1967_v5, %v1743_v37 }
 0x2bc   : > { %v2017_v60 = vpack.c.bf16 %v1998_v58, %v1997_v43  ;;  %v1970_v25 = vadd.f32 1.0, %v3051_v49  ;;  %2779 = vmatmul.mubr.bf16.gmra.mxu1 %v2016_v3  ;;  %v2000_v39 = vmul.f32 %v1968_v6, %v1744_v62  ;;  %v3053_v23 = vpop.eup %3052 }
 0x2bd   : > { %v2001_v34 = vmul.f32 %v1969_v46, %v1745_v47  ;;  %v3055_v0 = vpop.eup %3054  ;;  %v1972_v52 = vadd.f32 1.0, %v3053_v23 }
 0x2be   : > { %2782 = vmatprep.mubr.bf16.mxu1 %v2017_v60  ;;  %v2002_v28 = vmul.f32 %v1970_v25, %v1746_v50  ;;  %v2018_v19 = vpack.c.bf16 %v2000_v39, %v1999_v21  ;;  %v1971_v61 = vadd.f32 1.0, %v3055_v0 }
 0x2bf   : > { %v2004_v22 = vmul.f32 %v1972_v52, %v1748_v17 }
 0x2c0   : > { %v2019_v9 = vpack.c.bf16 %v2002_v28, %v2001_v34  ;;  %v2003_v44 = vmul.f32 %v1971_v61, %v1747_v40 }
 0x2c2   : > { %v2020_v27 = vpack.c.bf16 %v2004_v22, %v2003_v44 }
 0x2c4   : > { %2783 = vmatmul.mubr.bf16.gmra.mxu1 %v2018_v19 }
 0x2c5   : > { %2786 = vmatprep.mubr.bf16.mxu1 %v2019_v9 }
 0x2cc   : > { %2787 = vmatmul.mubr.bf16.gmra.mxu1 %v2020_v27 }
 0x348   : > { %v2760_v55 = vpop.f32.mrf.mxu1 }
 0x349   : > { %v2135_v57 = vadd.f32 %v2760_v55, %v4111_v59 }
 0x34a   : > { %v2126_v26 = vpop.f32.mrf.mxu1 }
 0x34b   : > { %2255 = vst.msk [vmem:[%s4114_s21 + $0x10] sm:$0xff] %vm778_vm0, %v2135_v57  ;;  %v2127_v18 = vadd.f32 %v4111_v59, %v2126_v26 }
 0x34c   : > { %v2761_v14 = vpop.f32.mrf.mxu1 }
 0x34d   : > { %2253 = vst.msk [vmem:[%s4114_s21] sm:$0xff] %vm778_vm0, %v2127_v18  ;;  %v2138_v30 = vadd.f32 %v2761_v14, %v4111_v59 }
 0x34e   : > { %v2129_v20 = vpop.f32.mrf.mxu1 }
 0x34f   : > { %2256 = vst.msk [vmem:[%s4114_s21 + $0x18] sm:$0xff] %vm778_vm0, %v2138_v30  ;;  %v2130_v13 = vadd.f32 %v4111_v59, %v2129_v20 }
 0x350   : > { %v2764_v51 = vpop.f32.mrf.mxu1 }
 0x351   : > { %2254 = vst.msk [vmem:[%s4114_s21 + $0x8] sm:$0xff] %vm778_vm0, %v2130_v13  ;;  %v2151_v35 = vadd.f32 %v2764_v51, %v4111_v59 }
 0x352   : > { %v2142_v10 = vpop.f32.mrf.mxu1 }
 0x353   : > { %2259 = vst.msk [vmem:[%s4114_s21 + $0x30] sm:$0xff] %vm778_vm0, %v2151_v35  ;;  %v2143_v42 = vadd.f32 %v4111_v59, %v2142_v10 }
 0x354   : > { %v2765_v2 = vpop.f32.mrf.mxu1 }
 0x355   : > { %2257 = vst.msk [vmem:[%s4114_s21 + $0x20] sm:$0xff] %vm778_vm0, %v2143_v42  ;;  %v2154_v1 = vadd.f32 %v2765_v2, %v4111_v59 }
 0x356   : > { %v2145_v41 = vpop.f32.mrf.mxu1 }
 0x357   : > { %2260 = vst.msk [vmem:[%s4114_s21 + $0x38] sm:$0xff] %vm778_vm0, %v2154_v1  ;;  %v2146_v24 = vadd.f32 %v4111_v59, %v2145_v41 }
 0x358   : > { %v2768_v8 = vpop.f32.mrf.mxu1 }
 0x359   : > { %2258 = vst.msk [vmem:[%s4114_s21 + $0x28] sm:$0xff] %vm778_vm0, %v2146_v24  ;;  %v2167_v11 = vadd.f32 %v2768_v8, %v4111_v59 }
 0x35a   : > { %v2158_v54 = vpop.f32.mrf.mxu1 }
 0x35b   : > { %2263 = vst.msk [vmem:[%s4114_s21 + $0x50] sm:$0xff] %vm778_vm0, %v2167_v11  ;;  %v2159_v16 = vadd.f32 %v4111_v59, %v2158_v54 }
 0x35c   : > { %v2769_v7 = vpop.f32.mrf.mxu1 }
 0x35d   : > { %2261 = vst.msk [vmem:[%s4114_s21 + $0x40] sm:$0xff] %vm778_vm0, %v2159_v16  ;;  %v2170_v32 = vadd.f32 %v2769_v7, %v4111_v59 }
 0x35e   : > { %v2161_v33 = vpop.f32.mrf.mxu1 }
 0x35f   : > { %2264 = vst.msk [vmem:[%s4114_s21 + $0x58] sm:$0xff] %vm778_vm0, %v2170_v32  ;;  %v2162_v12 = vadd.f32 %v4111_v59, %v2161_v33 }
 0x361   : > { %2262 = vst.msk [vmem:[%s4114_s21 + $0x48] sm:$0xff] %vm778_vm0, %v2162_v12 }
 0x369   : > { %v2772_v31 = vpop.f32.mrf.mxu1 }
 0x36a   : > { %v2183_v56 = vadd.f32 %v2772_v31, %v4111_v59 }
 0x36b   : > { %v2174_v53 = vpop.f32.mrf.mxu1 }
 0x36c   : > { %2267 = vst.msk [vmem:[%s4114_s21 + $0x70] sm:$0xff] %vm778_vm0, %v2183_v56  ;;  %v2175_v38 = vadd.f32 %v4111_v59, %v2174_v53 }
 0x36d   : > { %v2773_v36 = vpop.f32.mrf.mxu1 }
 0x36e   : > { %2265 = vst.msk [vmem:[%s4114_s21 + $0x60] sm:$0xff] %vm778_vm0, %v2175_v38  ;;  %v2186_v48 = vadd.f32 %v2773_v36, %v4111_v59 }
 0x36f   : > { %v2177_v63 = vpop.f32.mrf.mxu1 }
 0x370   : > { %2268 = vst.msk [vmem:[%s4114_s21 + $0x78] sm:$0xff] %vm778_vm0, %v2186_v48  ;;  %v2178_v45 = vadd.f32 %v4111_v59, %v2177_v63 }
 0x372   : > { %2266 = vst.msk [vmem:[%s4114_s21 + $0x68] sm:$0xff] %vm778_vm0, %v2178_v45 }
 0x374   : > { %v2776_v15 = vpop.f32.mrf.mxu1 }
 0x375   : > { %v2199_v29 = vadd.f32 %v2776_v15, %v4111_v59 }
 0x376   : > { %v2190_v4 = vpop.f32.mrf.mxu1 }
 0x377   : > { %2271 = vst.msk [vmem:[%s4114_s21 + $0x90] sm:$0xff] %vm778_vm0, %v2199_v29  ;;  %v2191_v43 = vadd.f32 %v4111_v59, %v2190_v4 }
 0x378   : > { %v2777_v58 = vpop.f32.mrf.mxu1 }
 0x379   : > { %2269 = vst.msk [vmem:[%s4114_s21 + $0x80] sm:$0xff] %vm778_vm0, %v2191_v43  ;;  %v2202_v49 = vadd.f32 %v2777_v58, %v4111_v59 }
 0x37a   : > { %v2193_v3 = vpop.f32.mrf.mxu1 }
 0x37b   : > { %2272 = vst.msk [vmem:[%s4114_s21 + $0x98] sm:$0xff] %vm778_vm0, %v2202_v49  ;;  %v2194_v6 = vadd.f32 %v4111_v59, %v2193_v3 }
 0x37c   : > { %v2780_v60 = vpop.f32.mrf.mxu1 }
 0x37d   : > { %2270 = vst.msk [vmem:[%s4114_s21 + $0x88] sm:$0xff] %vm778_vm0, %v2194_v6  ;;  %v2215_v50 = vadd.f32 %v2780_v60, %v4111_v59 }
 0x37e   : > { %v2206_v46 = vpop.f32.mrf.mxu1 }
 0x37f   : > { %2275 = vst.msk [vmem:[%s4114_s21 + $0xb0] sm:$0xff] %vm778_vm0, %v2215_v50  ;;  %v2207_v25 = vadd.f32 %v4111_v59, %v2206_v46 }
 0x380   : > { %v2781_v62 = vpop.f32.mrf.mxu1 }
 0x381   : > { %2273 = vst.msk [vmem:[%s4114_s21 + $0xa0] sm:$0xff] %vm778_vm0, %v2207_v25  ;;  %v2218_v5 = vadd.f32 %v2781_v62, %v4111_v59 }
 0x382   : > { %v2209_v47 = vpop.f32.mrf.mxu1 }
 0x383   : > { %2276 = vst.msk [vmem:[%s4114_s21 + $0xb8] sm:$0xff] %vm778_vm0, %v2218_v5  ;;  %v2210_v28 = vadd.f32 %v4111_v59, %v2209_v47 }
 0x384   : > { %v2784_v37 = vpop.f32.mrf.mxu1 }
 0x385   : > { %2274 = vst.msk [vmem:[%s4114_s21 + $0xa8] sm:$0xff] %vm778_vm0, %v2210_v28  ;;  %v2231_v39 = vadd.f32 %v2784_v37, %v4111_v59 }
 0x386   : > { %v2222_v23 = vpop.f32.mrf.mxu1 }
 0x387   : > { %2279 = vst.msk [vmem:[%s4114_s21 + $0xd0] sm:$0xff] %vm778_vm0, %v2231_v39  ;;  %v2223_v34 = vadd.f32 %v4111_v59, %v2222_v23 }
 0x388   : > { %v2785_v21 = vpop.f32.mrf.mxu1 }
 0x389   : > { %2277 = vst.msk [vmem:[%s4114_s21 + $0xc0] sm:$0xff] %vm778_vm0, %v2223_v34  ;;  %v2234_v0 = vadd.f32 %v2785_v21, %v4111_v59 }
 0x38a   : > { %v2225_v9 = vpop.f32.mrf.mxu1 }
 0x38b   : > { %2280 = vst.msk [vmem:[%s4114_s21 + $0xd8] sm:$0xff] %vm778_vm0, %v2234_v0  ;;  %v2226_v19 = vadd.f32 %v4111_v59, %v2225_v9 }
 0x38c   : > { %v2788_v52 = vpop.f32.mrf.mxu1 }
 0x38d   : > { %2278 = vst.msk [vmem:[%s4114_s21 + $0xc8] sm:$0xff] %vm778_vm0, %v2226_v19  ;;  %v2247_v17 = vadd.f32 %v2788_v52, %v4111_v59 }
 0x38e   : > { %v2238_v61 = vpop.f32.mrf.mxu1 }
 0x38f   : > { %2283 = vst.msk [vmem:[%s4114_s21 + $0xf0] sm:$0xff] %vm778_vm0, %v2247_v17  ;;  %v2239_v40 = vadd.f32 %v4111_v59, %v2238_v61 }
 0x390   : > { %v2789_v22 = vpop.f32.mrf.mxu1 }
 0x391   : > { %2281 = vst.msk [vmem:[%s4114_s21 + $0xe0] sm:$0xff] %vm778_vm0, %v2239_v40  ;;  %v2250_v44 = vadd.f32 %v2789_v22, %v4111_v59 }
 0x392   : > { %v2241_v27 = vpop.f32.mrf.mxu1 }
 0x393   : > { %2284 = vst.msk [vmem:[%s4114_s21 + $0xf8] sm:$0xff] %vm778_vm0, %v2250_v44  ;;  %v2242_v55 = vadd.f32 %v4111_v59, %v2241_v27 }
 0x395   : > { %2282 = vst.msk [vmem:[%s4114_s21 + $0xe8] sm:$0xff] %vm778_vm0, %v2242_v55 }
 0x396   : > { %3069 = shalt.err (!%p3066_p3)
}
 0x397   : > { %s3070_s13 = scalar_lea.hbm %s4211_s23, 4096  ;;  %s3074_s16 = scalar_lea.hbm %s4269_s7, 8192 }
 0x398   : > { %p3071_p4 = scmp.ne.s32.totalorder %s4211_s23, %s3070_s13  ;;  %p3075_p9 = scmp.lt.s32.totalorder %s4211_s23, %s4269_s7 }
 0x399   : > { %p3076_p10 = scmp.lt.s32.totalorder %s3074_s16, %s3070_s13 }
 0x39a   : > { %p3072_p7 = pnand %p3071_p4, %p3199_p5 }
 0x39b   : > { %p3077_p11 = por %p3076_p10, %p3075_p9 }
 0x39c   : > { %p3073_p8 = pneg %p3072_p7 }
 0x39e   : > { %p3078_p12 = pnand %p3077_p11, %p3073_p8 }
 0x3a0   : > { %3081 = shalt.err (!%p3078_p12)
}
 0x3a1   : > { %s3119_s19 = smov 128   ;;  %s3120_s20 = smov 8  }
 0x3a2   : > { %2795 = dma.vmem_to_hbm [thread:$0]  (%p3199_p5), %s4213_s18, 4096, %s4211_s23, %s4222_s28, %s3119_s19, %s3119_s19, %s3120_s20  }
 0x3a3 PF: > { %p2801_p13 = scmp.ge.s32.totalorder %s3116_s27, 2  ;;  %s2314_s22 = sand.u32 1, %s3104_s24  }
 0x3a4   : > { %s2315_s29 = scalar_lea.sflag [#allocation3], %s2314_s22 }
 0x3a5   : > { %p2798_p0 = pnand %p2801_p13, %p3203_p6 }
 0x3a7   : > { %p2799_p1 = pneg %p2798_p0 }
 0x3a9   : > { %3099 = dma.done.wait (%p2799_p1), %s2315_s29, 4096  }
 0x3aa   : > { %3101 = vsyncadd (%p2799_p1), %s2315_s29, 4294963200  ;;  %p17_p2 = scmp.ge.s32.totalorder %s3186_s30, 4   ;;  %s4273_s24 = smov %s3108_s25 }
 0x3ab   : > { %s4274_s25 = smov %s3112_s26  ;;  %s4275_s26 = smov %s3197_s10 }
 0x3ac   : > { %s4276_s27 = smov %s3186_s30  ;;  %19 = sbr.rel (!%p17_p2) target bundleno = 3 (0x3), region = 86 }
 0x3b1   :  { %2320 = vsyncpa [#allocation3], 1 }
 0x3b2   :  { %2322 = vsyncpa [#allocation3 + $0x1], 1 }

</bundles_post_ra>
